<compile_context>
chip_gen: v7x
topology: tpu7x:2x2x1
jax: 0.10.0
libtpu: 0.0.40
codegen_flags: <defaults>
</compile_context>

<pallas_src>
import functools

import numpy as np

import jax
import jax.numpy as jnp
from jax.experimental import pallas as pl
from jax.experimental.pallas import tpu as pltpu


# ---------------------------------------------------------------------------
# Fused Pallas kernel: all layers + streamed linear_mix, one (batch, L-tile).
# ---------------------------------------------------------------------------

def _fused_kernel(xa_ref, xb_ref, wg_ref, bg_ref, wr_ref, br_ref, wm_ref,
                  bm_ref, o_ref, *, dilations, ksize, cp, rf):
    """xa_ref : (1, 1, T)        current input tile
       xb_ref : (1, 1, T)        next input tile (first rf columns = halo)
       wg_ref : (n, 2*CP, K*CP)  packed gate weights [tanh rows | sigm rows]
       bg_ref : (n, 2*CP, 1)     packed gate biases
       wr_ref : (n, CP, CP)      packed 1x1 residual weights
       br_ref : (n, CP, 1)       packed residual biases
       wm_ref : (1, n*CP)        packed linear_mix weight
       bm_ref : (1, 1)           linear_mix bias
       o_ref  : (1, 1, T)        output tile
    All intermediate activations stay in VMEM / vregs (no HBM round trips)."""
    K = ksize
    n = len(dilations)
    T = o_ref.shape[-1]

    # Halo'd input window for this tile; only columns [0, T + rf) are used.
    x0 = jnp.concatenate([xa_ref[0], xb_ref[0]], axis=1)          # (1, 2T)
    lin = T + rf
    wm = wm_ref[...]                                              # (1, n*CP)

    # ----- layer 0: Cin == 1 -> VPU broadcast FMA (a contraction-1 matmul
    # would leave the MXU ~empty); bias folded into the first tap pass.
    d = dilations[0]
    lout = lin - d * (K - 1)
    wg0 = wg_ref[0]                                               # (2CP, K*CP)
    gate = bg_ref[0] + wg0[:, 0:1] * x0[:, 0:lout]
    for k in range(1, K):
        gate = gate + wg0[:, k * cp:k * cp + 1] * x0[:, k * d:k * d + lout]
    gated = jnp.tanh(gate[:cp]) * jax.nn.sigmoid(gate[cp:])       # (CP, lout)
    # streamed linear_mix contribution (replaces skip list + concat)
    mix = jnp.dot(wm[:, 0:cp], gated[:, lout - T:],
                  preferred_element_type=jnp.float32) + bm_ref[...]
    if n > 1:
        res = jnp.dot(wr_ref[0], gated, preferred_element_type=jnp.float32)
        # NOTE: when C < CP the padded rows of `cur` pick up broadcast x here;
        # harmless because every padded weight column stays exactly zero.
        cur = res + br_ref[0] + x0[:, lin - lout:lin]
        lin = lout

    # ----- layers 1..n-1: K accumulating matmuls on shifted views (no im2col)
    for i in range(1, n):
        d = dilations[i]
        lout = lin - d * (K - 1)
        wgi = wg_ref[i]                                           # (2CP, K*CP)
        gate = jnp.dot(wgi[:, 0:cp], cur[:, 0:lout],
                       preferred_element_type=jnp.float32)
        for k in range(1, K):
            gate = gate + jnp.dot(wgi[:, k * cp:(k + 1) * cp],
                                  cur[:, k * d:k * d + lout],
                                  preferred_element_type=jnp.float32)
        gate = gate + bg_ref[i]
        gated = jnp.tanh(gate[:cp]) * jax.nn.sigmoid(gate[cp:])   # (CP, lout)
        mix = mix + jnp.dot(wm[:, i * cp:(i + 1) * cp], gated[:, lout - T:],
                            preferred_element_type=jnp.float32)
        if i < n - 1:   # the last layer's residual output is never used
            res = jnp.dot(wr_ref[i], gated, preferred_element_type=jnp.float32)
            cur = res + br_ref[i] + cur[:, lin - lout:lin]
            lin = lout

    o_ref[0] = mix                                                # (1, T)


# ---------------------------------------------------------------------------
# pallas_call wrapper
# ---------------------------------------------------------------------------

def _fused_call(x3, packed, dilations, ksize, tile_l, n_t):
    b_dim = x3.shape[0]
    wg, bg, wr, br = packed["wg"], packed["bg"], packed["wr"], packed["br"]
    wm, bm = packed["wm"], packed["bm"]
    cp = wr.shape[-1]
    rf = sum(d * (ksize - 1) for d in dilations)
    lf_pad = n_t * tile_l

    kernel = functools.partial(_fused_kernel, dilations=tuple(dilations),
                               ksize=ksize, cp=cp, rf=rf)

    # Per-generation-safe VMEM budget: size from actual need rather than a
    # fixed 48 MiB (v7x only has 64 MiB physical VMEM).
    w_bytes = sum(int(np.prod(a.shape)) * 4 for a in (wg, bg, wr, br, wm, bm))
    tile_row_bytes = 8 * tile_l * 4            # (1, T) block padded to 8 sublanes
    io_bytes = 3 * 2 * tile_row_bytes          # xa, xb, out; double-buffered
    act_bytes = 12 * (2 * cp) * (tile_l + rf + 128) * 4   # generous live-act bound
    need = 2 * w_bytes + io_bytes + act_bytes
    vmem_limit = int(min(max(2 * need, 4 * 2 ** 20), 32 * 2 ** 20))

    return pl.pallas_call(
        kernel,
        out_shape=jax.ShapeDtypeStruct((b_dim, 1, lf_pad), jnp.float32),
        grid=(b_dim, n_t),
        in_specs=[
            pl.BlockSpec((1, 1, tile_l), lambda b, t: (b, 0, t)),      # tile t
            pl.BlockSpec((1, 1, tile_l), lambda b, t: (b, 0, t + 1)),  # halo tile
            pl.BlockSpec(wg.shape, lambda b, t: (0, 0, 0)),  # weights resident
            pl.BlockSpec(bg.shape, lambda b, t: (0, 0, 0)),
            pl.BlockSpec(wr.shape, lambda b, t: (0, 0, 0)),
            pl.BlockSpec(br.shape, lambda b, t: (0, 0, 0)),
            pl.BlockSpec(wm.shape, lambda b, t: (0, 0)),
            pl.BlockSpec(bm.shape, lambda b, t: (0, 0)),
        ],
        out_specs=pl.BlockSpec((1, 1, tile_l), lambda b, t: (b, 0, t)),
        compiler_params=pltpu.CompilerParams(
            # tiles are fully independent -> both axes parallel (keeps both
            # v7x TensorCores busy even at batch == 1)
            dimension_semantics=("parallel", "parallel"),
            vmem_limit_bytes=vmem_limit),
    )(x3, x3, wg, bg, wr, br, wm, bm)


def _choose_tile(lf_real, rf, max_tile=512):
    """Lane-aligned output tile; >= the receptive field so the halo fits in
    exactly one neighbouring tile; >= 256 lanes whenever the output allows."""
    min_tile = max(128, -(-rf // 128) * 128)
    want = -(-lf_real // 128) * 128
    return int(max(min_tile, min(max_tile, want)))


def wavenet_forward(x, packed, dilations, ksize, max_tile=512):
    """Pallas WaveNet forward.  x: (B, 1, L) float32 -> (B, 1, L - rf)."""
    b_dim, cin, length = x.shape
    assert cin == 1
    rf = sum(d * (ksize - 1) for d in dilations)
    lf_real = length - rf
    assert lf_real > 0, "input shorter than receptive field"
    tile_l = _choose_tile(lf_real, rf, max_tile)
    n_t = -(-lf_real // tile_l)
    # Pad with one extra tile so the halo read of block (t+1) is always in
    # range; right padding does not change the first lf_real outputs of a
    # VALID conv stack, so we trim afterwards.
    lp = (n_t + 1) * tile_l
    pad = lp - length
    x3 = jnp.pad(x, ((0, 0), (0, 0), (0, pad))) if pad > 0 else x[:, :, :lp]
    out = _fused_call(x3, packed, tuple(dilations), ksize, tile_l, n_t)
    return out[:, :, :lf_real]


# ---------------------------------------------------------------------------
# Parameter construction (PyTorch Conv1d-style logical shapes) + packing
# ---------------------------------------------------------------------------

def init_params(key, num_channels, dilation_depth, num_repeat, ksize):
    dilations = [2 ** d for d in range(dilation_depth)] * num_repeat
    c = num_channels
    layers = []
    for i, _ in enumerate(dilations):
        cin = 1 if i == 0 else c
        key, k1, k2, k3, k4, k5, k6 = jax.random.split(key, 7)
        sg = 1.0 / np.sqrt(cin * ksize)
        sr = 1.0 / np.sqrt(c)
        wt = jax.random.normal(k1, (c, cin, ksize), jnp.float32) * sg
        bt = jax.random.normal(k2, (c,), jnp.float32) * sg
        ws = jax.random.normal(k3, (c, cin, ksize), jnp.float32) * sg
        bs = jax.random.normal(k4, (c,), jnp.float32) * sg
        wr = jax.random.normal(k5, (c, c, 1), jnp.float32) * sr
        br = jax.random.normal(k6, (c,), jnp.float32) * sr
        layers.append((wt, bt, ws, bs, wr, br))
    ctot = c * len(dilations)
    key, k1, k2 = jax.random.split(key, 3)
    sm = 1.0 / np.sqrt(ctot)
    logical = {
        "layers": layers,
        "mix_w": jax.random.normal(k1, (1, ctot, 1), jnp.float32) * sm,
        "mix_b": jax.random.normal(k2, (1,), jnp.float32) * sm,
    }
    return logical, dilations


def pack_params(logical, dilations, ksize, num_channels):
    """Pack per-layer weights into a few contiguous, sublane-padded arrays."""
    n = len(dilations)
    c = num_channels
    k_sz = ksize
    cp = -(-c // 8) * 8                       # pad channels to f32 sublane tile
    wg = np.zeros((n, 2 * cp, k_sz * cp), np.float32)
    bg = np.zeros((n, 2 * cp, 1), np.float32)
    wr_p = np.zeros((n, cp, cp), np.float32)
    br_p = np.zeros((n, cp, 1), np.float32)
    for i, (wt, bt, ws, bs, wr, br) in enumerate(logical["layers"]):
        wt, ws, wr = np.asarray(wt), np.asarray(ws), np.asarray(wr)
        cin = wt.shape[1]
        for k in range(k_sz):
            wg[i, 0:c, k * cp:k * cp + cin] = wt[:, :, k]        # tanh rows
            wg[i, cp:cp + c, k * cp:k * cp + cin] = ws[:, :, k]  # sigm rows
        bg[i, 0:c, 0] = np.asarray(bt)
        bg[i, cp:cp + c, 0] = np.asarray(bs)
        wr_p[i, 0:c, 0:c] = wr[:, :, 0]
        br_p[i, 0:c, 0] = np.asarray(br)
    wm = np.zeros((1, n * cp), np.float32)
    mw = np.asarray(logical["mix_w"])[:, :, 0]                   # (1, Ctot)
    for i in range(n):
        wm[0, i * cp:i * cp + c] = mw[0, i * c:(i + 1) * c]
    bm = np.asarray(logical["mix_b"]).reshape(1, 1)
    return {"wg": jnp.asarray(wg), "bg": jnp.asarray(bg),
            "wr": jnp.asarray(wr_p), "br": jnp.asarray(br_p),
            "wm": jnp.asarray(wm), "bm": jnp.asarray(bm)}


# ---------------------------------------------------------------------------
# Pure-JAX reference (independent path through lax.conv_general_dilated)
# ---------------------------------------------------------------------------

def _conv1d_ref(x, w_oik, b, dilation):
    y = jax.lax.conv_general_dilated(
        x, w_oik, window_strides=(1,), padding="VALID",
        rhs_dilation=(dilation,), dimension_numbers=("NCH", "OIH", "NCH"))
    return y + b[None, :, None]


def wavenet_reference(x, logical, dilations, ksize):
    out = x
    skips = []
    for (wt, bt, ws, bs, wr, br), d in zip(logical["layers"], dilations):
        xin = out
        o_s = _conv1d_ref(xin, ws, bs, d)
        o_t = _conv1d_ref(xin, wt, bt, d)
        gated = jnp.tanh(o_t) * jax.nn.sigmoid(o_s)
        skips.append(gated)
        r = _conv1d_ref(gated, wr, br, 1)
        out = r + xin[:, :, xin.shape[2] - r.shape[2]:]
    lf = out.shape[2]
    cat = jnp.concatenate([s[:, :, s.shape[2] - lf:] for s in skips], axis=1)
    return _conv1d_ref(cat, logical["mix_w"], logical["mix_b"], 1)


# ---------------------------------------------------------------------------
# Main
# ---------------------------------------------------------------------------

if __name__ == "__main__":
    # small but lane/sublane friendly: C=8 (one f32 sublane tile);
    # 910 - receptive_field(14) = 896 outputs -> two 512-lane L-tiles (padded).
    num_channels, dilation_depth, num_repeat, ksize = 8, 3, 2, 2
    batch, length = 2, 910

    key = jax.random.PRNGKey(0)
    key, pkey, xkey = jax.random.split(key, 3)
    logical, dilations = init_params(pkey, num_channels, dilation_depth,
                                     num_repeat, ksize)
    packed = pack_params(logical, dilations, ksize, num_channels)
    x = jax.random.normal(xkey, (batch, 1, length), jnp.float32)

    fwd = jax.jit(functools.partial(wavenet_forward,
                                    dilations=dilations, ksize=ksize))
    out = jax.block_until_ready(fwd(x, packed))

    ref = jax.block_until_ready(wavenet_reference(x, logical, dilations, ksize))
    assert out.shape == ref.shape, (out.shape, ref.shape)
    max_err = float(jnp.max(jnp.abs(out - ref)))
    assert jnp.allclose(out, ref, atol=2e-4, rtol=2e-4), max_err

    print("KERNEL_OK")
</pallas_src>

<mosaic_0001>
module attributes {stable_mosaic.version = 11 : i64} {
  func.func @_fused_kernel(%arg0: i32, %arg1: i32, %arg2: memref<1x1x512xf32, #tpu.memory_space<vmem>>, %arg3: memref<1x1x512xf32, #tpu.memory_space<vmem>>, %arg4: memref<6x16x16xf32, #tpu.memory_space<vmem>>, %arg5: memref<6x16x1xf32, #tpu.memory_space<vmem>>, %arg6: memref<6x8x8xf32, #tpu.memory_space<vmem>>, %arg7: memref<6x8x1xf32, #tpu.memory_space<vmem>>, %arg8: memref<1x48xf32, #tpu.memory_space<vmem>>, %arg9: memref<1x1xf32, #tpu.memory_space<vmem>>, %arg10: memref<1x1x512xf32, #tpu.memory_space<vmem>>) attributes {dimension_semantics = [#tpu.dimension_semantics<parallel>, #tpu.dimension_semantics<parallel>], iteration_bounds = array<i64: 2, 2>, scalar_prefetch = 0 : i64, scratch_operands = 0 : i64, tpu.core_type = #tpu.core_type<tc>, window_params = [{transform_indices = @transform_0, window_bounds = array<i64: 1, 1, 512>}, {transform_indices = @transform_1, window_bounds = array<i64: 1, 1, 512>}, {pipeline_mode = #tpu.pipeline_mode<synchronous>, transform_indices = @transform_2, window_bounds = array<i64: 6, 16, 16>}, {pipeline_mode = #tpu.pipeline_mode<synchronous>, transform_indices = @transform_3, window_bounds = array<i64: 6, 16, 1>}, {pipeline_mode = #tpu.pipeline_mode<synchronous>, transform_indices = @transform_4, window_bounds = array<i64: 6, 8, 8>}, {pipeline_mode = #tpu.pipeline_mode<synchronous>, transform_indices = @transform_5, window_bounds = array<i64: 6, 8, 1>}, {pipeline_mode = #tpu.pipeline_mode<synchronous>, transform_indices = @transform_6, window_bounds = array<i64: 1, 48>}, {pipeline_mode = #tpu.pipeline_mode<synchronous>, transform_indices = @transform_7, window_bounds = array<i64: 1, 1>}, {transform_indices = @transform_8, window_bounds = array<i64: 1, 1, 512>}]} {
    %c0 = arith.constant 0 : index
    %c0_0 = arith.constant 0 : index
    %c0_1 = arith.constant 0 : index
    %0 = vector.load %arg2[%c0, %c0_0, %c0_1] : memref<1x1x512xf32, #tpu.memory_space<vmem>>, vector<1x1x512xf32>
    %1 = vector.shape_cast %0 : vector<1x1x512xf32> to vector<1x512xf32>
    %c0_2 = arith.constant 0 : index
    %c0_3 = arith.constant 0 : index
    %c0_4 = arith.constant 0 : index
    %2 = vector.load %arg3[%c0_2, %c0_3, %c0_4] : memref<1x1x512xf32, #tpu.memory_space<vmem>>, vector<1x1x512xf32>
    %3 = vector.shape_cast %2 : vector<1x1x512xf32> to vector<1x512xf32>
    %4 = tpu.concatenate %1, %3 in 1 : vector<1x512xf32>, vector<1x512xf32> -> vector<1x1024xf32>
    %c0_5 = arith.constant 0 : index
    %c0_6 = arith.constant 0 : index
    %5 = vector.load %arg8[%c0_5, %c0_6] : memref<1x48xf32, #tpu.memory_space<vmem>>, vector<1x48xf32>
    %c0_7 = arith.constant 0 : index
    %c0_8 = arith.constant 0 : index
    %c0_9 = arith.constant 0 : index
    %6 = vector.load %arg4[%c0_7, %c0_8, %c0_9] : memref<6x16x16xf32, #tpu.memory_space<vmem>>, vector<1x16x16xf32>
    %7 = vector.shape_cast %6 : vector<1x16x16xf32> to vector<16x16xf32>
    %c0_10 = arith.constant 0 : index
    %c0_11 = arith.constant 0 : index
    %c0_12 = arith.constant 0 : index
    %8 = vector.load %arg5[%c0_10, %c0_11, %c0_12] : memref<6x16x1xf32, #tpu.memory_space<vmem>>, vector<1x16x1xf32>
    %9 = vector.shape_cast %8 : vector<1x16x1xf32> to vector<16x1xf32>
    %10 = vector.extract_strided_slice %7 {offsets = [0, 0], sizes = [16, 1], strides = [1, 1]} : vector<16x16xf32> to vector<16x1xf32>
    %11 = vector.extract_strided_slice %4 {offsets = [0, 0], sizes = [1, 525], strides = [1, 1]} : vector<1x1024xf32> to vector<1x525xf32>
    %12 = vector.broadcast %10 : vector<16x1xf32> to vector<16x525xf32>
    %13 = vector.broadcast %11 : vector<1x525xf32> to vector<16x525xf32>
    %14 = arith.mulf %12, %13 : vector<16x525xf32>
    %15 = vector.broadcast %9 : vector<16x1xf32> to vector<16x525xf32>
    %16 = arith.addf %15, %14 : vector<16x525xf32>
    %17 = vector.extract_strided_slice %7 {offsets = [0, 8], sizes = [16, 1], strides = [1, 1]} : vector<16x16xf32> to vector<16x1xf32>
    %18 = vector.extract_strided_slice %4 {offsets = [0, 1], sizes = [1, 525], strides = [1, 1]} : vector<1x1024xf32> to vector<1x525xf32>
    %19 = vector.broadcast %17 : vector<16x1xf32> to vector<16x525xf32>
    %20 = vector.broadcast %18 : vector<1x525xf32> to vector<16x525xf32>
    %21 = arith.mulf %19, %20 : vector<16x525xf32>
    %22 = arith.addf %16, %21 : vector<16x525xf32>
    %23 = vector.extract_strided_slice %22 {offsets = [0, 0], sizes = [8, 525], strides = [1, 1]} : vector<16x525xf32> to vector<8x525xf32>
    %24 = math.tanh %23 : vector<8x525xf32>
    %25 = vector.extract_strided_slice %22 {offsets = [8, 0], sizes = [8, 525], strides = [1, 1]} : vector<16x525xf32> to vector<8x525xf32>
    %26 = arith.negf %25 : vector<8x525xf32>
    %27 = math.exp %26 : vector<8x525xf32>
    %cst = arith.constant 1.000000e+00 : f32
    %28 = vector.broadcast %cst : f32 to vector<8x525xf32>
    %29 = arith.addf %28, %27 : vector<8x525xf32>
    %30 = arith.divf %28, %29 : vector<8x525xf32>
    %31 = arith.mulf %24, %30 : vector<8x525xf32>
    %32 = vector.extract_strided_slice %5 {offsets = [0, 0], sizes = [1, 8], strides = [1, 1]} : vector<1x48xf32> to vector<1x8xf32>
    %33 = vector.extract_strided_slice %31 {offsets = [0, 13], sizes = [8, 512], strides = [1, 1]} : vector<8x525xf32> to vector<8x512xf32>
    %cst_13 = arith.constant dense<0.000000e+00> : vector<1x512xf32>
    %34 = tpu.matmul %32, %33, %cst_13 {dimension_numbers = #tpu.dot_dimension_numbers<[1], [0], [0], [1], [0, 0, 1, 1], [], []>} : vector<1x8xf32>, vector<8x512xf32>, vector<1x512xf32> -> vector<1x512xf32>
    %c0_14 = arith.constant 0 : index
    %c0_15 = arith.constant 0 : index
    %35 = vector.load %arg9[%c0_14, %c0_15] : memref<1x1xf32, #tpu.memory_space<vmem>>, vector<1x1xf32>
    %36 = vector.broadcast %35 : vector<1x1xf32> to vector<1x512xf32>
    %37 = arith.addf %34, %36 : vector<1x512xf32>
    %c0_16 = arith.constant 0 : index
    %c0_17 = arith.constant 0 : index
    %c0_18 = arith.constant 0 : index
    %38 = vector.load %arg6[%c0_16, %c0_17, %c0_18] : memref<6x8x8xf32, #tpu.memory_space<vmem>>, vector<1x8x8xf32>
    %39 = vector.shape_cast %38 : vector<1x8x8xf32> to vector<8x8xf32>
    %cst_19 = arith.constant dense<0.000000e+00> : vector<8x525xf32>
    %40 = tpu.matmul %39, %31, %cst_19 {dimension_numbers = #tpu.dot_dimension_numbers<[1], [0], [0], [1], [0, 0, 1, 1], [], []>} : vector<8x8xf32>, vector<8x525xf32>, vector<8x525xf32> -> vector<8x525xf32>
    %c0_20 = arith.constant 0 : index
    %c0_21 = arith.constant 0 : index
    %c0_22 = arith.constant 0 : index
    %41 = vector.load %arg7[%c0_20, %c0_21, %c0_22] : memref<6x8x1xf32, #tpu.memory_space<vmem>>, vector<1x8x1xf32>
    %42 = vector.shape_cast %41 : vector<1x8x1xf32> to vector<8x1xf32>
    %43 = vector.broadcast %42 : vector<8x1xf32> to vector<8x525xf32>
    %44 = arith.addf %40, %43 : vector<8x525xf32>
    %45 = vector.extract_strided_slice %4 {offsets = [0, 1], sizes = [1, 525], strides = [1, 1]} : vector<1x1024xf32> to vector<1x525xf32>
    %46 = vector.broadcast %45 : vector<1x525xf32> to vector<8x525xf32>
    %47 = arith.addf %44, %46 : vector<8x525xf32>
    %c1 = arith.constant 1 : index
    %c0_23 = arith.constant 0 : index
    %c0_24 = arith.constant 0 : index
    %48 = vector.load %arg4[%c1, %c0_23, %c0_24] : memref<6x16x16xf32, #tpu.memory_space<vmem>>, vector<1x16x16xf32>
    %49 = vector.shape_cast %48 : vector<1x16x16xf32> to vector<16x16xf32>
    %50 = vector.extract_strided_slice %49 {offsets = [0, 0], sizes = [16, 8], strides = [1, 1]} : vector<16x16xf32> to vector<16x8xf32>
    %51 = vector.extract_strided_slice %47 {offsets = [0, 0], sizes = [8, 523], strides = [1, 1]} : vector<8x525xf32> to vector<8x523xf32>
    %cst_25 = arith.constant dense<0.000000e+00> : vector<16x523xf32>
    %52 = tpu.matmul %50, %51, %cst_25 {dimension_numbers = #tpu.dot_dimension_numbers<[1], [0], [0], [1], [0, 0, 1, 1], [], []>} : vector<16x8xf32>, vector<8x523xf32>, vector<16x523xf32> -> vector<16x523xf32>
    %53 = vector.extract_strided_slice %49 {offsets = [0, 8], sizes = [16, 8], strides = [1, 1]} : vector<16x16xf32> to vector<16x8xf32>
    %54 = vector.extract_strided_slice %47 {offsets = [0, 2], sizes = [8, 523], strides = [1, 1]} : vector<8x525xf32> to vector<8x523xf32>
    %cst_26 = arith.constant dense<0.000000e+00> : vector<16x523xf32>
    %55 = tpu.matmul %53, %54, %cst_26 {dimension_numbers = #tpu.dot_dimension_numbers<[1], [0], [0], [1], [0, 0, 1, 1], [], []>} : vector<16x8xf32>, vector<8x523xf32>, vector<16x523xf32> -> vector<16x523xf32>
    %56 = arith.addf %52, %55 : vector<16x523xf32>
    %c1_27 = arith.constant 1 : index
    %c0_28 = arith.constant 0 : index
    %c0_29 = arith.constant 0 : index
    %57 = vector.load %arg5[%c1_27, %c0_28, %c0_29] : memref<6x16x1xf32, #tpu.memory_space<vmem>>, vector<1x16x1xf32>
    %58 = vector.shape_cast %57 : vector<1x16x1xf32> to vector<16x1xf32>
    %59 = vector.broadcast %58 : vector<16x1xf32> to vector<16x523xf32>
    %60 = arith.addf %56, %59 : vector<16x523xf32>
    %61 = vector.extract_strided_slice %60 {offsets = [0, 0], sizes = [8, 523], strides = [1, 1]} : vector<16x523xf32> to vector<8x523xf32>
    %62 = math.tanh %61 : vector<8x523xf32>
    %63 = vector.extract_strided_slice %60 {offsets = [8, 0], sizes = [8, 523], strides = [1, 1]} : vector<16x523xf32> to vector<8x523xf32>
    %64 = arith.negf %63 : vector<8x523xf32>
    %65 = math.exp %64 : vector<8x523xf32>
    %cst_30 = arith.constant 1.000000e+00 : f32
    %66 = vector.broadcast %cst_30 : f32 to vector<8x523xf32>
    %67 = arith.addf %66, %65 : vector<8x523xf32>
    %68 = arith.divf %66, %67 : vector<8x523xf32>
    %69 = arith.mulf %62, %68 : vector<8x523xf32>
    %70 = vector.extract_strided_slice %5 {offsets = [0, 8], sizes = [1, 8], strides = [1, 1]} : vector<1x48xf32> to vector<1x8xf32>
    %71 = vector.extract_strided_slice %69 {offsets = [0, 11], sizes = [8, 512], strides = [1, 1]} : vector<8x523xf32> to vector<8x512xf32>
    %cst_31 = arith.constant dense<0.000000e+00> : vector<1x512xf32>
    %72 = tpu.matmul %70, %71, %cst_31 {dimension_numbers = #tpu.dot_dimension_numbers<[1], [0], [0], [1], [0, 0, 1, 1], [], []>} : vector<1x8xf32>, vector<8x512xf32>, vector<1x512xf32> -> vector<1x512xf32>
    %73 = arith.addf %37, %72 : vector<1x512xf32>
    %c1_32 = arith.constant 1 : index
    %c0_33 = arith.constant 0 : index
    %c0_34 = arith.constant 0 : index
    %74 = vector.load %arg6[%c1_32, %c0_33, %c0_34] : memref<6x8x8xf32, #tpu.memory_space<vmem>>, vector<1x8x8xf32>
    %75 = vector.shape_cast %74 : vector<1x8x8xf32> to vector<8x8xf32>
    %cst_35 = arith.constant dense<0.000000e+00> : vector<8x523xf32>
    %76 = tpu.matmul %75, %69, %cst_35 {dimension_numbers = #tpu.dot_dimension_numbers<[1], [0], [0], [1], [0, 0, 1, 1], [], []>} : vector<8x8xf32>, vector<8x523xf32>, vector<8x523xf32> -> vector<8x523xf32>
    %c1_36 = arith.constant 1 : index
    %c0_37 = arith.constant 0 : index
    %c0_38 = arith.constant 0 : index
    %77 = vector.load %arg7[%c1_36, %c0_37, %c0_38] : memref<6x8x1xf32, #tpu.memory_space<vmem>>, vector<1x8x1xf32>
    %78 = vector.shape_cast %77 : vector<1x8x1xf32> to vector<8x1xf32>
    %79 = vector.broadcast %78 : vector<8x1xf32> to vector<8x523xf32>
    %80 = arith.addf %76, %79 : vector<8x523xf32>
    %81 = vector.extract_strided_slice %47 {offsets = [0, 2], sizes = [8, 523], strides = [1, 1]} : vector<8x525xf32> to vector<8x523xf32>
    %82 = arith.addf %80, %81 : vector<8x523xf32>
    %c2 = arith.constant 2 : index
    %c0_39 = arith.constant 0 : index
    %c0_40 = arith.constant 0 : index
    %83 = vector.load %arg4[%c2, %c0_39, %c0_40] : memref<6x16x16xf32, #tpu.memory_space<vmem>>, vector<1x16x16xf32>
    %84 = vector.shape_cast %83 : vector<1x16x16xf32> to vector<16x16xf32>
    %85 = vector.extract_strided_slice %84 {offsets = [0, 0], sizes = [16, 8], strides = [1, 1]} : vector<16x16xf32> to vector<16x8xf32>
    %86 = vector.extract_strided_slice %82 {offsets = [0, 0], sizes = [8, 519], strides = [1, 1]} : vector<8x523xf32> to vector<8x519xf32>
    %cst_41 = arith.constant dense<0.000000e+00> : vector<16x519xf32>
    %87 = tpu.matmul %85, %86, %cst_41 {dimension_numbers = #tpu.dot_dimension_numbers<[1], [0], [0], [1], [0, 0, 1, 1], [], []>} : vector<16x8xf32>, vector<8x519xf32>, vector<16x519xf32> -> vector<16x519xf32>
    %88 = vector.extract_strided_slice %84 {offsets = [0, 8], sizes = [16, 8], strides = [1, 1]} : vector<16x16xf32> to vector<16x8xf32>
    %89 = vector.extract_strided_slice %82 {offsets = [0, 4], sizes = [8, 519], strides = [1, 1]} : vector<8x523xf32> to vector<8x519xf32>
    %cst_42 = arith.constant dense<0.000000e+00> : vector<16x519xf32>
    %90 = tpu.matmul %88, %89, %cst_42 {dimension_numbers = #tpu.dot_dimension_numbers<[1], [0], [0], [1], [0, 0, 1, 1], [], []>} : vector<16x8xf32>, vector<8x519xf32>, vector<16x519xf32> -> vector<16x519xf32>
    %91 = arith.addf %87, %90 : vector<16x519xf32>
    %c2_43 = arith.constant 2 : index
    %c0_44 = arith.constant 0 : index
    %c0_45 = arith.constant 0 : index
    %92 = vector.load %arg5[%c2_43, %c0_44, %c0_45] : memref<6x16x1xf32, #tpu.memory_space<vmem>>, vector<1x16x1xf32>
    %93 = vector.shape_cast %92 : vector<1x16x1xf32> to vector<16x1xf32>
    %94 = vector.broadcast %93 : vector<16x1xf32> to vector<16x519xf32>
    %95 = arith.addf %91, %94 : vector<16x519xf32>
    %96 = vector.extract_strided_slice %95 {offsets = [0, 0], sizes = [8, 519], strides = [1, 1]} : vector<16x519xf32> to vector<8x519xf32>
    %97 = math.tanh %96 : vector<8x519xf32>
    %98 = vector.extract_strided_slice %95 {offsets = [8, 0], sizes = [8, 519], strides = [1, 1]} : vector<16x519xf32> to vector<8x519xf32>
    %99 = arith.negf %98 : vector<8x519xf32>
    %100 = math.exp %99 : vector<8x519xf32>
    %cst_46 = arith.constant 1.000000e+00 : f32
    %101 = vector.broadcast %cst_46 : f32 to vector<8x519xf32>
    %102 = arith.addf %101, %100 : vector<8x519xf32>
    %103 = arith.divf %101, %102 : vector<8x519xf32>
    %104 = arith.mulf %97, %103 : vector<8x519xf32>
    %105 = vector.extract_strided_slice %5 {offsets = [0, 16], sizes = [1, 8], strides = [1, 1]} : vector<1x48xf32> to vector<1x8xf32>
    %106 = vector.extract_strided_slice %104 {offsets = [0, 7], sizes = [8, 512], strides = [1, 1]} : vector<8x519xf32> to vector<8x512xf32>
    %cst_47 = arith.constant dense<0.000000e+00> : vector<1x512xf32>
    %107 = tpu.matmul %105, %106, %cst_47 {dimension_numbers = #tpu.dot_dimension_numbers<[1], [0], [0], [1], [0, 0, 1, 1], [], []>} : vector<1x8xf32>, vector<8x512xf32>, vector<1x512xf32> -> vector<1x512xf32>
    %108 = arith.addf %73, %107 : vector<1x512xf32>
    %c2_48 = arith.constant 2 : index
    %c0_49 = arith.constant 0 : index
    %c0_50 = arith.constant 0 : index
    %109 = vector.load %arg6[%c2_48, %c0_49, %c0_50] : memref<6x8x8xf32, #tpu.memory_space<vmem>>, vector<1x8x8xf32>
    %110 = vector.shape_cast %109 : vector<1x8x8xf32> to vector<8x8xf32>
    %cst_51 = arith.constant dense<0.000000e+00> : vector<8x519xf32>
    %111 = tpu.matmul %110, %104, %cst_51 {dimension_numbers = #tpu.dot_dimension_numbers<[1], [0], [0], [1], [0, 0, 1, 1], [], []>} : vector<8x8xf32>, vector<8x519xf32>, vector<8x519xf32> -> vector<8x519xf32>
    %c2_52 = arith.constant 2 : index
    %c0_53 = arith.constant 0 : index
    %c0_54 = arith.constant 0 : index
    %112 = vector.load %arg7[%c2_52, %c0_53, %c0_54] : memref<6x8x1xf32, #tpu.memory_space<vmem>>, vector<1x8x1xf32>
    %113 = vector.shape_cast %112 : vector<1x8x1xf32> to vector<8x1xf32>
    %114 = vector.broadcast %113 : vector<8x1xf32> to vector<8x519xf32>
    %115 = arith.addf %111, %114 : vector<8x519xf32>
    %116 = vector.extract_strided_slice %82 {offsets = [0, 4], sizes = [8, 519], strides = [1, 1]} : vector<8x523xf32> to vector<8x519xf32>
    %117 = arith.addf %115, %116 : vector<8x519xf32>
    %c3 = arith.constant 3 : index
    %c0_55 = arith.constant 0 : index
    %c0_56 = arith.constant 0 : index
    %118 = vector.load %arg4[%c3, %c0_55, %c0_56] : memref<6x16x16xf32, #tpu.memory_space<vmem>>, vector<1x16x16xf32>
    %119 = vector.shape_cast %118 : vector<1x16x16xf32> to vector<16x16xf32>
    %120 = vector.extract_strided_slice %119 {offsets = [0, 0], sizes = [16, 8], strides = [1, 1]} : vector<16x16xf32> to vector<16x8xf32>
    %121 = vector.extract_strided_slice %117 {offsets = [0, 0], sizes = [8, 518], strides = [1, 1]} : vector<8x519xf32> to vector<8x518xf32>
    %cst_57 = arith.constant dense<0.000000e+00> : vector<16x518xf32>
    %122 = tpu.matmul %120, %121, %cst_57 {dimension_numbers = #tpu.dot_dimension_numbers<[1], [0], [0], [1], [0, 0, 1, 1], [], []>} : vector<16x8xf32>, vector<8x518xf32>, vector<16x518xf32> -> vector<16x518xf32>
    %123 = vector.extract_strided_slice %119 {offsets = [0, 8], sizes = [16, 8], strides = [1, 1]} : vector<16x16xf32> to vector<16x8xf32>
    %124 = vector.extract_strided_slice %117 {offsets = [0, 1], sizes = [8, 518], strides = [1, 1]} : vector<8x519xf32> to vector<8x518xf32>
    %cst_58 = arith.constant dense<0.000000e+00> : vector<16x518xf32>
    %125 = tpu.matmul %123, %124, %cst_58 {dimension_numbers = #tpu.dot_dimension_numbers<[1], [0], [0], [1], [0, 0, 1, 1], [], []>} : vector<16x8xf32>, vector<8x518xf32>, vector<16x518xf32> -> vector<16x518xf32>
    %126 = arith.addf %122, %125 : vector<16x518xf32>
    %c3_59 = arith.constant 3 : index
    %c0_60 = arith.constant 0 : index
    %c0_61 = arith.constant 0 : index
    %127 = vector.load %arg5[%c3_59, %c0_60, %c0_61] : memref<6x16x1xf32, #tpu.memory_space<vmem>>, vector<1x16x1xf32>
    %128 = vector.shape_cast %127 : vector<1x16x1xf32> to vector<16x1xf32>
    %129 = vector.broadcast %128 : vector<16x1xf32> to vector<16x518xf32>
    %130 = arith.addf %126, %129 : vector<16x518xf32>
    %131 = vector.extract_strided_slice %130 {offsets = [0, 0], sizes = [8, 518], strides = [1, 1]} : vector<16x518xf32> to vector<8x518xf32>
    %132 = math.tanh %131 : vector<8x518xf32>
    %133 = vector.extract_strided_slice %130 {offsets = [8, 0], sizes = [8, 518], strides = [1, 1]} : vector<16x518xf32> to vector<8x518xf32>
    %134 = arith.negf %133 : vector<8x518xf32>
    %135 = math.exp %134 : vector<8x518xf32>
    %cst_62 = arith.constant 1.000000e+00 : f32
    %136 = vector.broadcast %cst_62 : f32 to vector<8x518xf32>
    %137 = arith.addf %136, %135 : vector<8x518xf32>
    %138 = arith.divf %136, %137 : vector<8x518xf32>
    %139 = arith.mulf %132, %138 : vector<8x518xf32>
    %140 = vector.extract_strided_slice %5 {offsets = [0, 24], sizes = [1, 8], strides = [1, 1]} : vector<1x48xf32> to vector<1x8xf32>
    %141 = vector.extract_strided_slice %139 {offsets = [0, 6], sizes = [8, 512], strides = [1, 1]} : vector<8x518xf32> to vector<8x512xf32>
    %cst_63 = arith.constant dense<0.000000e+00> : vector<1x512xf32>
    %142 = tpu.matmul %140, %141, %cst_63 {dimension_numbers = #tpu.dot_dimension_numbers<[1], [0], [0], [1], [0, 0, 1, 1], [], []>} : vector<1x8xf32>, vector<8x512xf32>, vector<1x512xf32> -> vector<1x512xf32>
    %143 = arith.addf %108, %142 : vector<1x512xf32>
    %c3_64 = arith.constant 3 : index
    %c0_65 = arith.constant 0 : index
    %c0_66 = arith.constant 0 : index
    %144 = vector.load %arg6[%c3_64, %c0_65, %c0_66] : memref<6x8x8xf32, #tpu.memory_space<vmem>>, vector<1x8x8xf32>
    %145 = vector.shape_cast %144 : vector<1x8x8xf32> to vector<8x8xf32>
    %cst_67 = arith.constant dense<0.000000e+00> : vector<8x518xf32>
    %146 = tpu.matmul %145, %139, %cst_67 {dimension_numbers = #tpu.dot_dimension_numbers<[1], [0], [0], [1], [0, 0, 1, 1], [], []>} : vector<8x8xf32>, vector<8x518xf32>, vector<8x518xf32> -> vector<8x518xf32>
    %c3_68 = arith.constant 3 : index
    %c0_69 = arith.constant 0 : index
    %c0_70 = arith.constant 0 : index
    %147 = vector.load %arg7[%c3_68, %c0_69, %c0_70] : memref<6x8x1xf32, #tpu.memory_space<vmem>>, vector<1x8x1xf32>
    %148 = vector.shape_cast %147 : vector<1x8x1xf32> to vector<8x1xf32>
    %149 = vector.broadcast %148 : vector<8x1xf32> to vector<8x518xf32>
    %150 = arith.addf %146, %149 : vector<8x518xf32>
    %151 = vector.extract_strided_slice %117 {offsets = [0, 1], sizes = [8, 518], strides = [1, 1]} : vector<8x519xf32> to vector<8x518xf32>
    %152 = arith.addf %150, %151 : vector<8x518xf32>
    %c4 = arith.constant 4 : index
    %c0_71 = arith.constant 0 : index
    %c0_72 = arith.constant 0 : index
    %153 = vector.load %arg4[%c4, %c0_71, %c0_72] : memref<6x16x16xf32, #tpu.memory_space<vmem>>, vector<1x16x16xf32>
    %154 = vector.shape_cast %153 : vector<1x16x16xf32> to vector<16x16xf32>
    %155 = vector.extract_strided_slice %154 {offsets = [0, 0], sizes = [16, 8], strides = [1, 1]} : vector<16x16xf32> to vector<16x8xf32>
    %156 = vector.extract_strided_slice %152 {offsets = [0, 0], sizes = [8, 516], strides = [1, 1]} : vector<8x518xf32> to vector<8x516xf32>
    %cst_73 = arith.constant dense<0.000000e+00> : vector<16x516xf32>
    %157 = tpu.matmul %155, %156, %cst_73 {dimension_numbers = #tpu.dot_dimension_numbers<[1], [0], [0], [1], [0, 0, 1, 1], [], []>} : vector<16x8xf32>, vector<8x516xf32>, vector<16x516xf32> -> vector<16x516xf32>
    %158 = vector.extract_strided_slice %154 {offsets = [0, 8], sizes = [16, 8], strides = [1, 1]} : vector<16x16xf32> to vector<16x8xf32>
    %159 = vector.extract_strided_slice %152 {offsets = [0, 2], sizes = [8, 516], strides = [1, 1]} : vector<8x518xf32> to vector<8x516xf32>
    %cst_74 = arith.constant dense<0.000000e+00> : vector<16x516xf32>
    %160 = tpu.matmul %158, %159, %cst_74 {dimension_numbers = #tpu.dot_dimension_numbers<[1], [0], [0], [1], [0, 0, 1, 1], [], []>} : vector<16x8xf32>, vector<8x516xf32>, vector<16x516xf32> -> vector<16x516xf32>
    %161 = arith.addf %157, %160 : vector<16x516xf32>
    %c4_75 = arith.constant 4 : index
    %c0_76 = arith.constant 0 : index
    %c0_77 = arith.constant 0 : index
    %162 = vector.load %arg5[%c4_75, %c0_76, %c0_77] : memref<6x16x1xf32, #tpu.memory_space<vmem>>, vector<1x16x1xf32>
    %163 = vector.shape_cast %162 : vector<1x16x1xf32> to vector<16x1xf32>
    %164 = vector.broadcast %163 : vector<16x1xf32> to vector<16x516xf32>
    %165 = arith.addf %161, %164 : vector<16x516xf32>
    %166 = vector.extract_strided_slice %165 {offsets = [0, 0], sizes = [8, 516], strides = [1, 1]} : vector<16x516xf32> to vector<8x516xf32>
    %167 = math.tanh %166 : vector<8x516xf32>
    %168 = vector.extract_strided_slice %165 {offsets = [8, 0], sizes = [8, 516], strides = [1, 1]} : vector<16x516xf32> to vector<8x516xf32>
    %169 = arith.negf %168 : vector<8x516xf32>
    %170 = math.exp %169 : vector<8x516xf32>
    %cst_78 = arith.constant 1.000000e+00 : f32
    %171 = vector.broadcast %cst_78 : f32 to vector<8x516xf32>
    %172 = arith.addf %171, %170 : vector<8x516xf32>
    %173 = arith.divf %171, %172 : vector<8x516xf32>
    %174 = arith.mulf %167, %173 : vector<8x516xf32>
    %175 = vector.extract_strided_slice %5 {offsets = [0, 32], sizes = [1, 8], strides = [1, 1]} : vector<1x48xf32> to vector<1x8xf32>
    %176 = vector.extract_strided_slice %174 {offsets = [0, 4], sizes = [8, 512], strides = [1, 1]} : vector<8x516xf32> to vector<8x512xf32>
    %cst_79 = arith.constant dense<0.000000e+00> : vector<1x512xf32>
    %177 = tpu.matmul %175, %176, %cst_79 {dimension_numbers = #tpu.dot_dimension_numbers<[1], [0], [0], [1], [0, 0, 1, 1], [], []>} : vector<1x8xf32>, vector<8x512xf32>, vector<1x512xf32> -> vector<1x512xf32>
    %178 = arith.addf %143, %177 : vector<1x512xf32>
    %c4_80 = arith.constant 4 : index
    %c0_81 = arith.constant 0 : index
    %c0_82 = arith.constant 0 : index
    %179 = vector.load %arg6[%c4_80, %c0_81, %c0_82] : memref<6x8x8xf32, #tpu.memory_space<vmem>>, vector<1x8x8xf32>
    %180 = vector.shape_cast %179 : vector<1x8x8xf32> to vector<8x8xf32>
    %cst_83 = arith.constant dense<0.000000e+00> : vector<8x516xf32>
    %181 = tpu.matmul %180, %174, %cst_83 {dimension_numbers = #tpu.dot_dimension_numbers<[1], [0], [0], [1], [0, 0, 1, 1], [], []>} : vector<8x8xf32>, vector<8x516xf32>, vector<8x516xf32> -> vector<8x516xf32>
    %c4_84 = arith.constant 4 : index
    %c0_85 = arith.constant 0 : index
    %c0_86 = arith.constant 0 : index
    %182 = vector.load %arg7[%c4_84, %c0_85, %c0_86] : memref<6x8x1xf32, #tpu.memory_space<vmem>>, vector<1x8x1xf32>
    %183 = vector.shape_cast %182 : vector<1x8x1xf32> to vector<8x1xf32>
    %184 = vector.broadcast %183 : vector<8x1xf32> to vector<8x516xf32>
    %185 = arith.addf %181, %184 : vector<8x516xf32>
    %186 = vector.extract_strided_slice %152 {offsets = [0, 2], sizes = [8, 516], strides = [1, 1]} : vector<8x518xf32> to vector<8x516xf32>
    %187 = arith.addf %185, %186 : vector<8x516xf32>
    %c5 = arith.constant 5 : index
    %c0_87 = arith.constant 0 : index
    %c0_88 = arith.constant 0 : index
    %188 = vector.load %arg4[%c5, %c0_87, %c0_88] : memref<6x16x16xf32, #tpu.memory_space<vmem>>, vector<1x16x16xf32>
    %189 = vector.shape_cast %188 : vector<1x16x16xf32> to vector<16x16xf32>
    %190 = vector.extract_strided_slice %189 {offsets = [0, 0], sizes = [16, 8], strides = [1, 1]} : vector<16x16xf32> to vector<16x8xf32>
    %191 = vector.extract_strided_slice %187 {offsets = [0, 0], sizes = [8, 512], strides = [1, 1]} : vector<8x516xf32> to vector<8x512xf32>
    %cst_89 = arith.constant dense<0.000000e+00> : vector<16x512xf32>
    %192 = tpu.matmul %190, %191, %cst_89 {dimension_numbers = #tpu.dot_dimension_numbers<[1], [0], [0], [1], [0, 0, 1, 1], [], []>} : vector<16x8xf32>, vector<8x512xf32>, vector<16x512xf32> -> vector<16x512xf32>
    %193 = vector.extract_strided_slice %189 {offsets = [0, 8], sizes = [16, 8], strides = [1, 1]} : vector<16x16xf32> to vector<16x8xf32>
    %194 = vector.extract_strided_slice %187 {offsets = [0, 4], sizes = [8, 512], strides = [1, 1]} : vector<8x516xf32> to vector<8x512xf32>
    %cst_90 = arith.constant dense<0.000000e+00> : vector<16x512xf32>
    %195 = tpu.matmul %193, %194, %cst_90 {dimension_numbers = #tpu.dot_dimension_numbers<[1], [0], [0], [1], [0, 0, 1, 1], [], []>} : vector<16x8xf32>, vector<8x512xf32>, vector<16x512xf32> -> vector<16x512xf32>
    %196 = arith.addf %192, %195 : vector<16x512xf32>
    %c5_91 = arith.constant 5 : index
    %c0_92 = arith.constant 0 : index
    %c0_93 = arith.constant 0 : index
    %197 = vector.load %arg5[%c5_91, %c0_92, %c0_93] : memref<6x16x1xf32, #tpu.memory_space<vmem>>, vector<1x16x1xf32>
    %198 = vector.shape_cast %197 : vector<1x16x1xf32> to vector<16x1xf32>
    %199 = vector.broadcast %198 : vector<16x1xf32> to vector<16x512xf32>
    %200 = arith.addf %196, %199 : vector<16x512xf32>
    %201 = vector.extract_strided_slice %200 {offsets = [0, 0], sizes = [8, 512], strides = [1, 1]} : vector<16x512xf32> to vector<8x512xf32>
    %202 = math.tanh %201 : vector<8x512xf32>
    %203 = vector.extract_strided_slice %200 {offsets = [8, 0], sizes = [8, 512], strides = [1, 1]} : vector<16x512xf32> to vector<8x512xf32>
    %204 = arith.negf %203 : vector<8x512xf32>
    %205 = math.exp %204 : vector<8x512xf32>
    %cst_94 = arith.constant 1.000000e+00 : f32
    %206 = vector.broadcast %cst_94 : f32 to vector<8x512xf32>
    %207 = arith.addf %206, %205 : vector<8x512xf32>
    %208 = arith.divf %206, %207 : vector<8x512xf32>
    %209 = arith.mulf %202, %208 : vector<8x512xf32>
    %210 = vector.extract_strided_slice %5 {offsets = [0, 40], sizes = [1, 8], strides = [1, 1]} : vector<1x48xf32> to vector<1x8xf32>
    %cst_95 = arith.constant dense<0.000000e+00> : vector<1x512xf32>
    %211 = tpu.matmul %210, %209, %cst_95 {dimension_numbers = #tpu.dot_dimension_numbers<[1], [0], [0], [1], [0, 0, 1, 1], [], []>} : vector<1x8xf32>, vector<8x512xf32>, vector<1x512xf32> -> vector<1x512xf32>
    %212 = arith.addf %178, %211 : vector<1x512xf32>
    %c0_96 = arith.constant 0 : index
    %c0_97 = arith.constant 0 : index
    %c0_98 = arith.constant 0 : index
    %213 = vector.load %arg10[%c0_96, %c0_97, %c0_98] : memref<1x1x512xf32, #tpu.memory_space<vmem>>, vector<1x1x512xf32>
    %214 = vector.shape_cast %213 : vector<1x1x512xf32> to vector<1x512xf32>
    %215 = vector.shape_cast %212 : vector<1x512xf32> to vector<1x1x512xf32>
    tpu.vector_store %arg10[%c0_96, %c0_97, %c0_98], %215 {strides = array<i32>} : memref<1x1x512xf32, #tpu.memory_space<vmem>>, vector<1x1x512xf32>,
    return
  }
  func.func @transform_0(%arg0: i32, %arg1: i32) -> (i32, i32, i32) {
    %c0_i32 = arith.constant 0 : i32
    %c0_i32_0 = arith.constant 0 : i32
    return %arg0, %c0_i32, %arg1 : i32, i32, i32
  }
  func.func @transform_1(%arg0: i32, %arg1: i32) -> (i32, i32, i32) {
    %c1_i32 = arith.constant 1 : i32
    %0 = arith.addi %arg1, %c1_i32 : i32
    %c0_i32 = arith.constant 0 : i32
    %c0_i32_0 = arith.constant 0 : i32
    return %arg0, %c0_i32, %0 : i32, i32, i32
  }
  func.func @transform_2(%arg0: i32, %arg1: i32) -> (i32, i32, i32) {
    %c0_i32 = arith.constant 0 : i32
    %c0_i32_0 = arith.constant 0 : i32
    %c0_i32_1 = arith.constant 0 : i32
    %c0_i32_2 = arith.constant 0 : i32
    return %c0_i32, %c0_i32_0, %c0_i32_1 : i32, i32, i32
  }
  func.func @transform_3(%arg0: i32, %arg1: i32) -> (i32, i32, i32) {
    %c0_i32 = arith.constant 0 : i32
    %c0_i32_0 = arith.constant 0 : i32
    %c0_i32_1 = arith.constant 0 : i32
    %c0_i32_2 = arith.constant 0 : i32
    return %c0_i32, %c0_i32_0, %c0_i32_1 : i32, i32, i32
  }
  func.func @transform_4(%arg0: i32, %arg1: i32) -> (i32, i32, i32) {
    %c0_i32 = arith.constant 0 : i32
    %c0_i32_0 = arith.constant 0 : i32
    %c0_i32_1 = arith.constant 0 : i32
    %c0_i32_2 = arith.constant 0 : i32
    return %c0_i32, %c0_i32_0, %c0_i32_1 : i32, i32, i32
  }
  func.func @transform_5(%arg0: i32, %arg1: i32) -> (i32, i32, i32) {
    %c0_i32 = arith.constant 0 : i32
    %c0_i32_0 = arith.constant 0 : i32
    %c0_i32_1 = arith.constant 0 : i32
    %c0_i32_2 = arith.constant 0 : i32
    return %c0_i32, %c0_i32_0, %c0_i32_1 : i32, i32, i32
  }
  func.func @transform_6(%arg0: i32, %arg1: i32) -> (i32, i32) {
    %c0_i32 = arith.constant 0 : i32
    %c0_i32_0 = arith.constant 0 : i32
    %c0_i32_1 = arith.constant 0 : i32
    return %c0_i32, %c0_i32_0 : i32, i32
  }
  func.func @transform_7(%arg0: i32, %arg1: i32) -> (i32, i32) {
    %c0_i32 = arith.constant 0 : i32
    %c0_i32_0 = arith.constant 0 : i32
    %c0_i32_1 = arith.constant 0 : i32
    return %c0_i32, %c0_i32_0 : i32, i32
  }
  func.func @transform_8(%arg0: i32, %arg1: i32) -> (i32, i32, i32) {
    %c0_i32 = arith.constant 0 : i32
    %c0_i32_0 = arith.constant 0 : i32
    return %arg0, %c0_i32, %arg1 : i32, i32, i32
  }
}

</mosaic_0001>

<bundles_post_ra>
// kernel: wavenet_forward.1
= control target key start
LH: loop header
LB: loop body
LE: loop exit
PB: predicated region body
PF: predicated region fallthrough
CT: control target
= control target key end

     0   :  { %s6234_s29 = smov 0   ;;  %s6236_s30 = smov 0   ;;  %s6831_s0 = inlined_call_operand.vmem [shape: f32[2,1,1536], index: 0, kind: input, shape index: {}, may-alias: {0,1}]   ;;  %s6832_s1 = inlined_call_operand.vmem [shape: f32[2,1,1536], index: 1, kind: input, shape index: {}, may-alias: {0,1}]   ;;  %s6833_s2 = inlined_call_operand.vmem [shape: f32[6,16,16], index: 2, kind: input, shape index: {}]   ;;  %s6834_s3 = inlined_call_operand.vmem [shape: f32[6,16,1], index: 3, kind: input, shape index: {}]   ;;  %s6835_s4 = inlined_call_operand.vmem [shape: f32[6,8,8], index: 4, kind: input, shape index: {}]   ;;  %s6836_s5 = inlined_call_operand.vmem [shape: f32[6,8,1], index: 5, kind: input, shape index: {}]   ;;  %s6837_s6 = inlined_call_operand.vmem [shape: f32[1,48], index: 6, kind: input, shape index: {}]   ;;  %s6838_s7 = inlined_call_operand.<no memory space> [shape: f32[1,1], index: 7, kind: input, shape index: {}]   ;;  %s6839_s8 = inlined_call_operand.vmem [shape: f32[2,1,1024], index: 8, kind: output, shape index: {}]  }
   0x1   :  { %v13_v0 = vstv %s6838_s7  ;;  %s6238_s9 = smov 0   ;;  %s6240_s10 = smov 0  }
   0x2   :  { %14 = vst [vmem:[#allocation2] sm:$0x1] %v13_v0  ;;  %s6242_s11 = smov 0  }
   0x3 LB: > { %s29_s7 = sadd.s32 1, %s6159_s9  ;;  %s32_s12 = sadd.s32 1, %s6163_s10  ;;  %s6167_s11 = sphi %s6242_s11, %s20_s11   ;;  %s6163_s10 = sphi %s6240_s10, %s6843_s10   ;;  %s6159_s9 = sphi %s6238_s9, %s6842_s9   ;;  %s6155_s30 = sphi %s6236_s30, %s6841_s30   ;;  %s6151_s29 = sphi %s6234_s29, %s6840_s29  }
   0x4   : > { %p30_p0 = scmp.ge.s32.totalorder %s29_s7, 2  ;;  %p5574_p1 = scmp.ge.s32.totalorder %s6167_s11, 1 }
   0x5   : > { %p304_p2 = scmp.lt.s32.totalorder %s6167_s11, 5 }
   0x6   : > { %s6845_s7 = smov (%p30_p0, %s29_s7), 0  ;;  %s6847_s12 = smov (!%p30_p0, %s32_s12), %s6163_s10 }
   0x7   : > { %p305_p3 = pnand %p5574_p1, %p304_p2  ;;  %p34_p4 = scmp.ge.s32.totalorder %s6847_s12, 2 }
   0x8   : > { %v413_v1 = vld [vmem:[%s6833_s2 + $0x8] sm:$0xff] (!%p305_p3)  ;;  %v6169_v2 = vmov (!%p305_p3), 8   ;;  %v6170_v3 = vmov (!%p305_p3), 0   ;;  %v412_v4 = vld [vmem:[%s6833_s2] sm:$0xff] (!%p305_p3)  ;;  %s6275_s19 = sshll.u32 (!%p305_p3), %s6151_s29, 2  ;;  %p354_p5 = scmp.lt.s32.totalorder (!%p305_p3), %s6155_s30, 1  ;;  %v385_v6 = vlaneseq (!%p305_p3) }
   0x9   : > { %s6849_s12 = smov (%p34_p4, %s6847_s12), 0  ;;  %308 = sbr.rel (%p305_p3) target bundleno = 4153 (0x1039), region = 52 }
   0xa   : > { %5952 = vset.pattern.permute.xlu0 (!%p305_p3), %v6169_v2  ;;  %5953 = vset.pattern.permute.xlu1 (!%p305_p3), %v6170_v3  ;;  %v415_v5 = vld [vmem:[%s6834_s3 + $0x8] sm:$0xff] (!%p305_p3)  ;;  %p356_p6 = scmp.lt.s32.totalorder (!%p305_p3), %s6275_s19, 11  ;;  %s5722_s22 = sadd.s32 (!%p305_p3), 4, %s6275_s19  ;;  %v6286_v7 = vshrl.u32 (!%p305_p3), %v385_v6, 7  ;;  %v414_v31 = vld [vmem:[%s6834_s3] sm:$0xff] (!%p305_p3)  ;;  %vm524_vm0 = vcmask (!%p305_p3), 1039360  }
   0xb   : > { %481 = vperm.xlu0 (!%p305_p3), %5952, %v413_v1   ;;  %423 = vperm.xlu1 (!%p305_p3), %5953, %v413_v1   ;;  %p366_p7 = scmp.lt.s32.totalorder (!%p305_p3), %s5722_s22, 11  ;;  %s6171_s14 = smov (!%p305_p3), 127   ;;  %vm618_vm1 = vcmask (!%p305_p3), 941056   ;;  %vm627_vm2 = vcmask (!%p305_p3), 64512   ;;  %vm6174_vm3 = vmmov (!%p305_p3), 0   ;;  %vm1048_vm4 = vcmask (!%p305_p3), 1031168  }
   0xc   : > { %v395_v8 = vsub.s32 (!%p305_p3), 2, %v6286_v7  ;;  %v391_v9 = vsub.s32 (!%p305_p3), 1, %v6286_v7  ;;  %v399_v11 = vsub.s32 (!%p305_p3), 3, %v6286_v7  ;;  %v6295_v12 = vsub.s32 (!%p305_p3), 0, %v6286_v7  ;;  %s6173_s17 = smov (!%p305_p3), 115   ;;  %s6175_s25 = smov (!%p305_p3), 126  }
   0xd   : > { %s6176_s28 = smov (!%p305_p3), 120   ;;  %vm1608_vm5 = vcmask (!%p305_p3), 957440   ;;  %vm2018_vm6 = vcmask (!%p305_p3), 1014784   ;;  %vm2574_vm7 = vcmask (!%p305_p3), 990208   ;;  %vm3539_vm8 = vcmask (!%p305_p3), 998400   ;;  %p376_p8 = scmp.lt.s32.totalorder (!%p305_p3), %s6275_s19, 7 }
   0xe   : > { %vm5471_vm9 = vcmp.lt.s32.totalorder (!%p305_p3), %v385_v6, 512 }
   0xf   : > { %477 = vperm.xlu0 (!%p305_p3), %5952, %v412_v4   ;;  %463 = vperm.xlu1 (!%p305_p3), %5953, %v415_v5  }
  0x10   : > { %s6851_s30 = smov (!%p354_p5, %s6155_s30), 1  ;;  %s6853_s22 = smov (!%p366_p7, %s5722_s22), 11 }
  0x11   : > { %s357_s20 = scalar_select %p356_p6, %s6275_s19, 11 }
  0x12   : > { %s5894_s21 = smul.u32 12, %s6851_s30  ;;  %s6855_s19 = smov (!%p376_p8, %s6275_s19), 7 }
  0x13   : > { %5954 = vset.pattern.permute.xlu0 %v6170_v3 }
  0x14   : > { %s359_s23 = sadd.s32 %s5894_s21, %s357_s20  ;;  %s369_s27 = sadd.s32 %s5894_s21, %s6853_s22 }
  0x15   : > { %s360_s26 = scalar_lea.vmem %s6831_s0, %s359_s23  ;;  %s370_s13 = scalar_lea.vmem %s6832_s1, %s369_s27 }
  0x16   : > { %v382_v10 = vld [vmem:[%s360_s26] sm:$0xf]  ;;  %s6177_s20 = smov 117   ;;  %s6178_s26 = smov 124  }
  0x17   : > { %v396_v13 = vrot.slane %v382_v10, %v395_v8  ;;  %v392_v14 = vrot.slane %v382_v10, %v391_v9  ;;  %v400_v15 = vrot.slane %v382_v10, %v399_v11  ;;  %v388_v18 = vrot.slane %v382_v10, %v6295_v12  ;;  %v383_v19 = vld [vmem:[%s370_s13] sm:$0xf]  ;;  %s6179_s21 = smov 121   ;;  %s6180_s22 = smov 112  }
  0x18   : > { %v409_v25 = vrot.slane %v383_v19, %v6295_v12  ;;  %s6182_s23 = smov 104  }
  0x19   : > { %v6301_v16 = vrot.slane %v396_v13, %v6295_v12  ;;  %v6304_v17 = vrot.slane %v392_v14, %v6295_v12  ;;  %v6308_v21 = vrot.slane %v400_v15, %v6295_v12  ;;  %v6313_v24 = vrot.slane %v388_v18, %v6295_v12 }
  0x1a   : > { %v6321_v28 = vrot.slane %v409_v25, %v6295_v12 }
  0x8a   : > { %v482_v20 = vpop.permute.xlu0 %481  ;;  %v424_v37 = vpop.permute.xlu1 %423 }
  0x8b   : > { %v491_v22 = vmul.f32 %v482_v20, %v6301_v16  ;;  %v490_v23 = vmul.f32 %v482_v20, %v6304_v17  ;;  %v492_v26 = vmul.f32 %v482_v20, %v6308_v21  ;;  %v489_v27 = vmul.f32 %v482_v20, %v6313_v24 }
  0x8c   : > { %v493_v29 = vmul.f32 %v482_v20, %v6321_v28  ;;  %v452_v39 = vmul.f32 %v6304_v17, %v424_v37  ;;  %v453_v40 = vmul.f32 %v6301_v16, %v424_v37  ;;  %v451_v44 = vmul.f32 %v6313_v24, %v424_v37 }
  0x8d   : > { %518 = vrot.lane.b32.xlu1 %v491_v22, %s6171_s14  ;;  %516 = vrot.lane.b32.xlu0 %v490_v23, %s6171_s14  ;;  %v454_v52 = vmul.f32 %v6308_v21, %v424_v37  ;;  %v455_v55 = vmul.f32 %v6321_v28, %v424_v37 }
  0x8e   : > { %v478_v30 = vpop.permute.xlu0 %477  ;;  %v464_v38 = vpop.permute.xlu1 %463 }
  0x8f   : > { %v485_v32 = vmul.f32 %v478_v30, %v6304_v17  ;;  %v487_v33 = vmul.f32 %v478_v30, %v6308_v21  ;;  %v486_v34 = vmul.f32 %v478_v30, %v6301_v16  ;;  %v488_v35 = vmul.f32 %v478_v30, %v6321_v28 }
  0x90   : > { %v484_v36 = vmul.f32 %v478_v30, %v6313_v24  ;;  %v472_v43 = vadd.f32 %v464_v38, %v452_v39  ;;  %v473_v46 = vadd.f32 %v464_v38, %v453_v40  ;;  %v471_v51 = vadd.f32 %v464_v38, %v451_v44 }
  0x91   : > { %520 = vrot.lane.b32.xlu0 %v492_v26, %s6171_s14  ;;  %514 = vrot.lane.b32.xlu1 %v489_v27, %s6171_s14  ;;  %v474_v59 = vadd.f32 %v464_v38, %v454_v52  ;;  %v475_v0 = vadd.f32 %v464_v38, %v455_v55 }
  0x95   : > { %522 = vrot.lane.b32.xlu0 %v493_v29, %s6171_s14  ;;  %418 = vperm.xlu1 %5953, %v412_v4  }
  0x99   : > { %458 = vperm.xlu0 %5954, %v414_v31   ;;  %506 = vrot.lane.b32.xlu1 %v485_v32, %s6171_s14 }
  0x9d   : > { %510 = vrot.lane.b32.xlu0 %v487_v33, %s6171_s14  ;;  %508 = vrot.lane.b32.xlu1 %v486_v34, %s6171_s14 }
  0xa1   : > { %512 = vrot.lane.b32.xlu0 %v488_v35, %s6171_s14  ;;  %504 = vrot.lane.b32.xlu1 %v484_v36, %s6171_s14 }
  0xff   : > { %v519_v41 = vpop.permute.xlu1 %518  ;;  %v517_v42 = vpop.permute.xlu0 %516 }
 0x100   : > { %v530_v45 = vsel %vm524_vm0, %v517_v42, %v519_v41 }
 0x101   : > { %v549_v49 = vadd.f32 %v530_v45, %v472_v43 }
 0x103   : > { %v521_v47 = vpop.permute.xlu0 %520  ;;  %v515_v48 = vpop.permute.xlu1 %514  ;;  %v5580_v57 = vmul.f32 -1.442695, %v549_v49 }
 0x104   : > { %v531_v50 = vsel %vm524_vm0, %v519_v41, %v521_v47  ;;  %v529_v53 = vsel %vm524_vm0, %v515_v48, %v517_v42  ;;  %v6172_v48 = vmov 0.0  }
 0x105   : > { %v550_v54 = vadd.f32 %v531_v50, %v473_v46  ;;  %v548_v58 = vadd.f32 %v529_v53, %v471_v51  ;;  %5955 = vpow2.f32 %v5580_v57  ;;  %695 = vmatprep.mubr.f32.mxu0 %v6172_v48  ;;  %766 = vmatprep.mubr.f32.mxu1 %v6172_v48 }
 0x107   : > { %v523_v56 = vpop.permute.xlu0 %522  ;;  %v5581_v61 = vmul.f32 -1.442695, %v550_v54  ;;  %v5579_v63 = vmul.f32 -1.442695, %v548_v58 }
 0x108   : > { %v532_v60 = vsel %vm524_vm0, %v521_v47, %v523_v56  ;;  %v552_v2 = vadd.f32 %v523_v56, %v475_v0 }
 0x109   : > { %v551_v62 = vadd.f32 %v532_v60, %v474_v59  ;;  %5957 = vpow2.f32 %v5581_v61 }
 0x10a   : > { %5959 = vpow2.f32 %v5579_v63  ;;  %v5583_v3 = vmul.f32 -1.442695, %v552_v2  ;;  %v774_v63 = vld [vmem:[%s6836_s5] sm:$0xff] }
 0x10b   : > { %v5582_v1 = vmul.f32 -1.442695, %v551_v62 }
 0x10d   : > { %5961 = vpow2.f32 %v5582_v1 }
 0x10e   : > { %5963 = vpow2.f32 %v5583_v3 }
 0x10f   : > { %v5956_v5 = vpop.eup %5955 }
 0x110   : > { %v574_v11 = vadd.f32 1.0, %v5956_v5 }
 0x112   : > { %5965 = vrcp.f32 %v574_v11 }
 0x113   : > { %v5958_v8 = vpop.eup %5957 }
 0x114   : > { %v419_v4 = vpop.permute.xlu1 %418  ;;  %v5960_v13 = vpop.eup %5959  ;;  %v575_v18 = vadd.f32 1.0, %v5958_v8 }
 0x115   : > { %v447_v14 = vmul.f32 %v6304_v17, %v419_v4  ;;  %v448_v15 = vmul.f32 %v6301_v16, %v419_v4  ;;  %v573_v26 = vadd.f32 1.0, %v5960_v13  ;;  %v449_v32 = vmul.f32 %v6308_v21, %v419_v4 }
 0x116   : > { %v446_v33 = vmul.f32 %v6313_v24, %v419_v4  ;;  %5967 = vrcp.f32 %v575_v18  ;;  %v450_v35 = vmul.f32 %v6321_v28, %v419_v4 }
 0x117   : > { %v5962_v19 = vpop.eup %5961 }
 0x118   : > { %v459_v9 = vpop.permute.xlu0 %458  ;;  %v507_v10 = vpop.permute.xlu1 %506  ;;  %v576_v34 = vadd.f32 1.0, %v5962_v19 }
 0x119   : > { %v467_v22 = vadd.f32 %v459_v9, %v447_v14  ;;  %v468_v23 = vadd.f32 %v459_v9, %v448_v15  ;;  %v469_v37 = vadd.f32 %v459_v9, %v449_v32  ;;  %v466_v38 = vadd.f32 %v459_v9, %v446_v33  ;;  %v5964_v43 = vpop.eup %5963 }
 0x11a   : > { %v470_v40 = vadd.f32 %v459_v9, %v450_v35  ;;  %v577_v47 = vadd.f32 1.0, %v5964_v43  ;;  %v5603_v43 = vld [vmem:[%s6834_s3 + $0x10] sm:$0xff] }
 0x11c   : > { %v511_v20 = vpop.permute.xlu0 %510  ;;  %v509_v25 = vpop.permute.xlu1 %508 }
 0x11d   : > { %v526_v27 = vsel %vm524_vm0, %v507_v10, %v509_v25  ;;  %v527_v29 = vsel %vm524_vm0, %v509_v25, %v511_v20  ;;  %v5966_v49 = vpop.eup %5965 }
 0x11e   : > { %v544_v30 = vadd.f32 %v526_v27, %v467_v22  ;;  %v545_v31 = vadd.f32 %v527_v29, %v468_v23 }
 0x120   : > { %5969 = vtanh.f32 %v544_v30  ;;  %v513_v36 = vpop.permute.xlu0 %512  ;;  %v505_v39 = vpop.permute.xlu1 %504 }
 0x121   : > { %5971 = vtanh.f32 %v545_v31  ;;  %v528_v41 = vsel %vm524_vm0, %v511_v20, %v513_v36  ;;  %v525_v42 = vsel %vm524_vm0, %v505_v39, %v507_v10  ;;  %v547_v46 = vadd.f32 %v513_v36, %v470_v40  ;;  %v5968_v50 = vpop.eup %5967  ;;  %v5589_v39 = vld [vmem:[%s6833_s2 + $0x10] sm:$0xff] }
 0x122   : > { %5973 = vrcp.f32 %v573_v26  ;;  %v546_v44 = vadd.f32 %v528_v41, %v469_v37  ;;  %v543_v45 = vadd.f32 %v525_v42, %v466_v38  ;;  %v5590_v41 = vld [vmem:[%s6833_s2 + $0x18] sm:$0xff] }
 0x123   : > { %5975 = vrcp.f32 %v576_v34 }
 0x124   : > { %5977 = vtanh.f32 %v546_v44  ;;  %v5604_v44 = vld [vmem:[%s6834_s3 + $0x18] sm:$0xff] }
 0x125   : > { %5979 = vtanh.f32 %v543_v45 }
 0x126   : > { %5981 = vtanh.f32 %v547_v46 }
 0x127   : > { %5983 = vrcp.f32 %v577_v47 }
 0x12a   : > { %v5970_v51 = vpop.eup %5969 }
 0x12b   : > { %v5972_v52 = vpop.eup %5971  ;;  %v589_v53 = vmul.f32 %v5970_v51, %v5966_v49 }
 0x12c   : > { %v5974_v54 = vpop.eup %5973  ;;  %v590_v55 = vmul.f32 %v5972_v52, %v5968_v50 }
 0x12d   : > { %v5976_v56 = vpop.eup %5975  ;;  %610 = vrot.lane.b32.xlu1 %v589_v53, %s6173_s17 }
 0x12e   : > { %v5978_v57 = vpop.eup %5977  ;;  %612 = vrot.lane.b32.xlu0 %v590_v55, %s6173_s17 }
 0x12f   : > { %v5980_v58 = vpop.eup %5979  ;;  %v591_v59 = vmul.f32 %v5978_v57, %v5976_v56 }
 0x130   : > { %v588_v60 = vmul.f32 %v5980_v58, %v5974_v54  ;;  %v5982_v61 = vpop.eup %5981 }
 0x131   : > { %v5984_v62 = vpop.eup %5983 }
 0x132   : > { %614 = vrot.lane.b32.xlu0 %v591_v59, %s6173_s17  ;;  %608 = vrot.lane.b32.xlu1 %v588_v60, %s6173_s17  ;;  %v592_v0 = vmul.f32 %v5984_v62, %v5982_v61 }
 0x136   : > { %777 = vperm.xlu0 %5954, %v774_v63   ;;  %616 = vrot.lane.b32.xlu1 %v592_v0, %s6173_s17 }
 0x13a   : > { %1002 = vrot.lane.b32.xlu1 %v6304_v17, %s6171_s14  ;;  %1004 = vrot.lane.b32.xlu0 %v6301_v16, %s6171_s14  ;;  %v6377_v16 = vld [vmem:[%s6837_s6] sm:$0x1] }
 0x13e   : > { %1006 = vrot.lane.b32.xlu1 %v6308_v21, %s6171_s14  ;;  %1000 = vrot.lane.b32.xlu0 %v6313_v24, %s6171_s14 }
 0x142   : > { %1008 = vrot.lane.b32.xlu1 %v6321_v28, %s6171_s14  ;;  %v773_v28 = vld [vmem:[%s6835_s4] sm:$0xff] }
 0x19f   : > { %v611_v1 = vpop.permute.xlu1 %610 }
 0x1a0   : > { %v613_v2 = vpop.permute.xlu0 %612 }
 0x1a1   : > { %v620_v3 = vsel %vm618_vm1, %v611_v1, %v613_v2 }
 0x1a2   : > { %631 = vmatprep.subr.mxu0 %v620_v3 }
 0x1a4   : > { %v609_v4 = vpop.permute.xlu1 %608  ;;  %v615_v21 = vpop.permute.xlu0 %614 }
 0x1a5   : > { %v619_v17 = vsel %vm618_vm1, %v609_v4, %v611_v1  ;;  %v621_v8 = vsel %vm618_vm1, %v613_v2, %v615_v21 }
 0x1a6   : > { %632 = vmatpush1.msra.mxu0 %v619_v17 }
 0x1a7   : > { %5584 = vmatmul.mubr.msk.f32.vlgmr.msra.gmra.mrb[0].mxu0 %vm627_vm2, %v6377_v16  ;;  %783 = vmatprep.subr.mxu0 %v589_v53 }
 0x1a8   : > { %784 = vmatpush1.msra.mxu0 %v588_v60  ;;  %v617_v24 = vpop.permute.xlu1 %616  ;;  %847 = vmatprep.mubr.f32.mxu0 %v6172_v48 }
 0x1a9   : > { %v622_v5 = vsel %vm618_vm1, %v615_v21, %v617_v24  ;;  %5757 = vmatprep.subr.mxu0 %v6172_v48 }
 0x1aa   : > { %702 = vmatprep.subr.mxu1 %v622_v5 }
 0x1ab   : > { %703 = vmatpush1.msra.mxu1 %v621_v8  ;;  %5586 = vmatmul.mubr.msk.f32.vlgmr.msra.gmra.mrb[2].mxu0 %vm627_vm2, %v773_v28 }
 0x1ac   : > { %5758 = vmatpush3.msra.mxu0 %v592_v0  ;;  %5585 = vmatmul.mubr.msk.f32.vlgmr.msra.gmra.mrb[0].mxu1 %vm627_vm2, %v6377_v16  ;;  %v1003_v11 = vpop.permute.xlu1 %1002 }
 0x1ad   : > { %854 = vmatprep.subr.mxu1 %v591_v59  ;;  %5759 = vmatprep.mubr.msk.f32.mxu0 %vm6174_vm3, %v6172_v48 }
 0x1ae   : > { %855 = vmatpush1.msra.mxu1 %v590_v55  ;;  %918 = vmatprep.mubr.f32.mxu1 %v6172_v48 }
 0x1af   : > { %5760 = vmatmul.mubr.msk.f32.vlgmr.msra.gmra.mrb[4].mxu0 %vm627_vm2, %v773_v28 }
 0x1b0   : > { %5587 = vmatmul.mubr.msk.f32.vlgmr.msra.gmra.mrb[2].mxu1 %vm627_vm2, %v773_v28  ;;  %1203 = vmatprep.mubr.f32.mxu0 %v6172_v48  ;;  %v1007_v14 = vpop.permute.xlu1 %1006 }
 0x1b1   : > { %1126 = vmatprep.mubr.f32.mxu1 %v6172_v48 }
 0x1b4   : > { %v1009_v26 = vpop.permute.xlu1 %1008 }
 0x1b5   : > { %v778_v9 = vpop.permute.xlu0 %777  ;;  %v1013_v37 = vsel %vm524_vm0, %v1007_v14, %v1009_v26 }
 0x1b9   : > { %v1005_v10 = vpop.permute.xlu0 %1004 }
 0x1ba   : > { %v1011_v30 = vsel %vm524_vm0, %v1003_v11, %v1005_v10  ;;  %v1012_v33 = vsel %vm524_vm0, %v1005_v10, %v1007_v14 }
 0x1bd   : > { %v1001_v13 = vpop.permute.xlu0 %1000 }
 0x1be   : > { %v1010_v18 = vsel %vm524_vm0, %v1001_v13, %v1003_v11 }
 0x27e   : > { %v849_v15 = vpop.f32.mrb[2].mxu0 }
 0x27f   : > { %v850_v19 = vadd.f32 %v849_v15, %v778_v9  ;;  %v851_v20 = vpop.f32.mrb[3].mxu0 }
 0x280   : > { %v852_v23 = vadd.f32 %v851_v20, %v778_v9 }
 0x281   : > { %v1019_v22 = vadd.f32 %v1010_v18, %v850_v19 }
 0x282   : > { %v991_v25 = vpop.f32.mrb[4].mxu0  ;;  %v1020_v34 = vadd.f32 %v1011_v30, %v852_v23 }
 0x283   : > { %v920_v27 = vpop.f32.mrb[2].mxu1  ;;  %1038 = vrot.lane.b32.xlu0 %v1019_v22, %s6175_s25  ;;  %v5761_v29 = vpop.f32.mrb[5].mxu0  ;;  %v992_v40 = vadd.f32 %v991_v25, %v778_v9 }
 0x284   : > { %v921_v31 = vadd.f32 %v920_v27, %v778_v9  ;;  %v922_v32 = vpop.f32.mrb[3].mxu1 }
 0x285   : > { %v923_v35 = vadd.f32 %v922_v32, %v778_v9  ;;  %v1023_v42 = vadd.f32 %v1009_v26, %v992_v40 }
 0x286   : > { %v1021_v36 = vadd.f32 %v1012_v33, %v921_v31 }
 0x287   : > { %1040 = vrot.lane.b32.xlu0 %v1020_v34, %s6175_s25  ;;  %v1022_v38 = vadd.f32 %v1013_v37, %v923_v35 }
 0x288   : > { %1042 = vrot.lane.b32.xlu1 %v1021_v36, %s6175_s25 }
 0x28b   : > { %1044 = vrot.lane.b32.xlu0 %v1022_v38, %s6175_s25 }
 0x28c   : > { %1029 = vrot.lane.b32.xlu1 %v5589_v39, %s6176_s28 }
 0x28f   : > { %1031 = vrot.lane.b32.xlu0 %v5590_v41, %s6176_s28 }
 0x290   : > { %1046 = vrot.lane.b32.xlu1 %v1023_v42, %s6175_s25 }
 0x293   : > { %1529 = vperm.xlu0 %5954, %v5603_v43  }
 0x294   : > { %1534 = vperm.xlu1 %5953, %v5604_v44  }
 0x2f5   : > { %v1039_v45 = vpop.permute.xlu0 %1038 }
 0x2f9   : > { %v1041_v46 = vpop.permute.xlu0 %1040 }
 0x2fa   : > { %v1043_v47 = vpop.permute.xlu1 %1042  ;;  %v6426_v50 = vsel %vm1048_vm4, %v1039_v45, %v1041_v46 }
 0x2fb   : > { %v6423_v49 = vsel %vm1048_vm4, %v1041_v46, %v1043_v47 }
 0x2fc   : > { %1062 = vmatprep.subr.mxu1 %v6423_v49 }
 0x2fd   : > { %v1045_v51 = vpop.permute.xlu0 %1044  ;;  %1063 = vmatpush1.msra.mxu1 %v6426_v50 }
 0x2fe   : > { %v1030_v52 = vpop.permute.xlu1 %1029  ;;  %v6441_v56 = vsel %vm1048_vm4, %v1043_v47, %v1045_v51 }
 0x2ff   : > { %5591 = vmatmul.mubr.msk.f32.vlgmr.msra.gmra.mrb[4].mxu1 %vm627_vm2, %v1030_v52 }
 0x300   : > { %1132 = vmatprep.mubr.f32.mxu1 %v6172_v48 }
 0x301   : > { %v1032_v53 = vpop.permute.xlu0 %1031 }
 0x302   : > { %v6432_v54 = vpop.permute.xlu1 %1046 }
 0x303   : > { %5592 = vmatmul.mubr.msk.f32.gmra.mrb[6].mxu1 %vm627_vm2, %v1032_v53  ;;  %5762 = vmatprep.subr.mxu1 %v6432_v54  ;;  %v6438_v55 = vsel %vm1048_vm4, %v1045_v51, %v6432_v54  ;;  %v6465_v51 = vrot.slane %v6377_v16, %v6295_v12 }
 0x304   : > { %1139 = vmatprep.subr.mxu0 %v6438_v55  ;;  %5763 = vmatpush3.msra.mxu1 %v6432_v54 }
 0x305   : > { %5764 = vmatprep.mubr.msk.f32.mxu1 %vm627_vm2, %v1030_v52  ;;  %1140 = vmatpush1.msra.mxu0 %v6441_v56 }
 0x306   : > { %1295 = vmatprep.subr.mxu1 %v1020_v34  ;;  %5593 = vmatmul.mubr.msk.f32.vlgmr.msra.gmra.mrb[6].mxu0 %vm627_vm2, %v1030_v52 }
 0x307   : > { %1372 = vmatprep.subr.mxu0 %v1022_v38  ;;  %5765 = vmatmul.mubr.msk.f32.vlgmr.msra.gmra.mrb[8].mxu1 %vm627_vm2, %v1032_v53 }
 0x308   : > { %1296 = vmatpush1.msra.mxu1 %v1019_v22  ;;  %1373 = vmatpush1.msra.mxu0 %v1021_v36 }
 0x309   : > { %5767 = vmatprep.subr.mxu1 %v1023_v42  ;;  %1209 = vmatprep.mubr.f32.mxu0 %v6172_v48 }
 0x30a   : > { %5594 = vmatmul.mubr.msk.f32.gmra.mrb[8].mxu0 %vm627_vm2, %v1032_v53  ;;  %1359 = vmatprep.mubr.f32.mxu1 %v6172_v48  ;;  %v5613_v53 = vld [vmem:[%s6836_s5 + $0x8] sm:$0xff] }
 0x30b   : > { %5597 = vmatmul.mubr.msk.f32.vlgmr.msra.gmra.mrb[4].mxu1 %vm627_vm2, %v5589_v39  ;;  %1436 = vmatprep.mubr.f32.mxu0 %v6172_v48 }
 0x30c   : > { %5768 = vmatpush3.msra.mxu1 %v1023_v42  ;;  %1365 = vmatprep.mubr.f32.mxu1 %v6172_v48 }
 0x30e   : > { %5599 = vmatmul.mubr.msk.f32.vlgmr.msra.gmra.mrb[6].mxu0 %vm627_vm2, %v5589_v39 }
 0x30f   : > { %5598 = vmatmul.mubr.msk.f32.gmra.mrb[6].mxu1 %vm627_vm2, %v5590_v41  ;;  %1442 = vmatprep.mubr.f32.mxu0 %v6172_v48 }
 0x310   : > { %5769 = vmatprep.mubr.msk.f32.mxu1 %vm627_vm2, %v5589_v39 }
 0x312   : > { %5600 = vmatmul.mubr.msk.f32.gmra.mrb[8].mxu0 %vm627_vm2, %v5590_v41  ;;  %v1530_v13 = vpop.permute.xlu0 %1529 }
 0x313   : > { %5770 = vmatmul.mubr.msk.f32.vlgmr.msra.gmra.mrb[8].mxu1 %vm627_vm2, %v5590_v41  ;;  %1683 = vmatprep.mubr.f32.mxu0 %v6172_v48  ;;  %v1535_v59 = vpop.permute.xlu1 %1534 }
 0x314   : > { %1754 = vmatprep.mubr.f32.mxu1 %v6172_v48 }
 0x3de   : > { %v1361_v57 = vpop.f32.mrb[4].mxu1 }
 0x3df   : > { %v1363_v58 = vpop.f32.mrb[5].mxu1  ;;  %v1537_v14 = vadd.f32 %v1530_v13, %v1361_v57 }
 0x3e0   : > { %v1538_v15 = vadd.f32 %v1530_v13, %v1363_v58 }
 0x3e1   : > { %v1438_v60 = vpop.f32.mrb[6].mxu0 }
 0x3e2   : > { %v1367_v61 = vpop.f32.mrb[6].mxu1  ;;  %v1440_v62 = vpop.f32.mrb[7].mxu0  ;;  %v1539_v18 = vadd.f32 %v1530_v13, %v1438_v60 }
 0x3e3   : > { %v1542_v63 = vadd.f32 %v1535_v59, %v1367_v61  ;;  %v1369_v0 = vpop.f32.mrb[7].mxu1  ;;  %v1540_v19 = vadd.f32 %v1530_v13, %v1440_v62  ;;  %v5612_v62 = vld [vmem:[%s6835_s4 + $0x8] sm:$0xff] }
 0x3e4   : > { %v1543_v1 = vadd.f32 %v1535_v59, %v1369_v0 }
 0x3e5   : > { %v5605_v2 = vmul.f32 -1.442695, %v1542_v63  ;;  %v1444_v3 = vpop.f32.mrb[8].mxu0 }
 0x3e6   : > { %v5606_v4 = vmul.f32 -1.442695, %v1543_v1  ;;  %v1544_v17 = vadd.f32 %v1535_v59, %v1444_v3  ;;  %v1446_v21 = vpop.f32.mrb[9].mxu0  ;;  %v5771_v24 = vpop.f32.mrb[8].mxu1 }
 0x3e7   : > { %5985 = vpow2.f32 %v5605_v2  ;;  %v1545_v28 = vadd.f32 %v1535_v59, %v1446_v21  ;;  %v1546_v5 = vadd.f32 %v5771_v24, %v1535_v59  ;;  %v1515_v8 = vpop.f32.mrb[9].mxu1 }
 0x3e8   : > { %5987 = vpow2.f32 %v5606_v4  ;;  %v5607_v9 = vmul.f32 -1.442695, %v1544_v17  ;;  %v1541_v25 = vadd.f32 %v1530_v13, %v1515_v8 }
 0x3e9   : > { %v5608_v10 = vmul.f32 -1.442695, %v1545_v28  ;;  %v5609_v11 = vmul.f32 -1.442695, %v1546_v5 }
 0x3ea   : > { %5989 = vpow2.f32 %v5607_v9 }
 0x3eb   : > { %5991 = vpow2.f32 %v5608_v10 }
 0x3ec   : > { %5993 = vpow2.f32 %v5609_v11 }
 0x3ed   : > { %5995 = vtanh.f32 %v1537_v14 }
 0x3ee   : > { %5997 = vtanh.f32 %v1538_v15  ;;  %v5618_v15 = vld [vmem:[%s6833_s2 + $0x28] sm:$0xff] }
 0x3ef   : > { %5999 = vtanh.f32 %v1539_v18 }
 0x3f0   : > { %6001 = vtanh.f32 %v1540_v19 }
 0x3f1   : > { %v5986_v20 = vpop.eup %5985 }
 0x3f2   : > { %v5988_v22 = vpop.eup %5987  ;;  %v1567_v23 = vadd.f32 1.0, %v5986_v20  ;;  %v5632_v20 = vld [vmem:[%s6834_s3 + $0x28] sm:$0xff] }
 0x3f3   : > { %v1568_v26 = vadd.f32 1.0, %v5988_v22  ;;  %v5631_v22 = vld [vmem:[%s6834_s3 + $0x20] sm:$0xff] }
 0x3f4   : > { %v5990_v27 = vpop.eup %5989  ;;  %6003 = vrcp.f32 %v1567_v23 }
 0x3f5   : > { %v5992_v29 = vpop.eup %5991  ;;  %6005 = vrcp.f32 %v1568_v26  ;;  %v1569_v30 = vadd.f32 1.0, %v5990_v27 }
 0x3f6   : > { %v5994_v31 = vpop.eup %5993  ;;  %v1570_v32 = vadd.f32 1.0, %v5992_v29  ;;  %6007 = vtanh.f32 %v1541_v25 }
 0x3f7   : > { %6009 = vrcp.f32 %v1569_v30  ;;  %v1571_v33 = vadd.f32 1.0, %v5994_v31  ;;  %v5996_v34 = vpop.eup %5995 }
 0x3f8   : > { %6011 = vrcp.f32 %v1570_v32  ;;  %v5998_v35 = vpop.eup %5997 }
 0x3f9   : > { %6013 = vrcp.f32 %v1571_v33  ;;  %v6000_v36 = vpop.eup %5999 }
 0x3fa   : > { %v6002_v37 = vpop.eup %6001 }
 0x3fe   : > { %v6004_v38 = vpop.eup %6003 }
 0x3ff   : > { %v6006_v39 = vpop.eup %6005  ;;  %v1582_v40 = vmul.f32 %v6004_v38, %v5996_v34 }
 0x400   : > { %v6008_v41 = vpop.eup %6007  ;;  %v1583_v42 = vmul.f32 %v6006_v39, %v5998_v35 }
 0x401   : > { %v6010_v43 = vpop.eup %6009 }
 0x402   : > { %v6012_v44 = vpop.eup %6011  ;;  %1600 = vrot.lane.b32.xlu1 %v1583_v42, %s6177_s20  ;;  %v1584_v45 = vmul.f32 %v6010_v43, %v6000_v36 }
 0x403   : > { %v6014_v46 = vpop.eup %6013  ;;  %v1585_v47 = vmul.f32 %v6012_v44, %v6002_v37 }
 0x404   : > { %1602 = vrot.lane.b32.xlu0 %v1584_v45, %s6177_s20  ;;  %v1586_v52 = vmul.f32 %v6014_v46, %v6008_v41 }
 0x406   : > { %1598 = vrot.lane.b32.xlu1 %v1582_v40, %s6177_s20 }
 0x408   : > { %1591 = vrot.lane.b32.xlu0 %v6465_v51, %s6176_s28 }
 0x40a   : > { %1604 = vrot.lane.b32.xlu1 %v1585_v47, %s6177_s20 }
 0x40c   : > { %1606 = vrot.lane.b32.xlu0 %v1586_v52, %s6177_s20 }
 0x40e   : > { %1771 = vperm.xlu1 %5953, %v5613_v53  }
 0x474   : > { %v1601_v57 = vpop.permute.xlu1 %1600 }
 0x476   : > { %v1603_v58 = vpop.permute.xlu0 %1602 }
 0x477   : > { %v1610_v59 = vsel %vm1608_vm5, %v1601_v57, %v1603_v58 }
 0x478   : > { %1619 = vmatprep.subr.mxu0 %v1610_v59  ;;  %v1599_v16 = vpop.permute.xlu1 %1598 }
 0x479   : > { %v1609_v60 = vsel %vm1608_vm5, %v1599_v16, %v1601_v57 }
 0x47a   : > { %v1592_v61 = vpop.permute.xlu0 %1591  ;;  %1620 = vmatpush1.msra.mxu0 %v1609_v60 }
 0x47b   : > { %5610 = vmatmul.mubr.msk.f32.vlgmr.msra.gmra.mrb[0].mxu0 %vm627_vm2, %v1592_v61  ;;  %1777 = vmatprep.subr.mxu0 %v1583_v42 }
 0x47c   : > { %1778 = vmatpush1.msra.mxu0 %v1582_v40  ;;  %1841 = vmatprep.mubr.f32.mxu0 %v6172_v48  ;;  %v1605_v63 = vpop.permute.xlu1 %1604 }
 0x47d   : > { %1848 = vmatprep.subr.mxu0 %v1585_v47  ;;  %v1611_v2 = vsel %vm1608_vm5, %v1603_v58, %v1605_v63 }
 0x47e   : > { %v1607_v0 = vpop.permute.xlu0 %1606 }
 0x47f   : > { %5614 = vmatmul.mubr.msk.f32.vlgmr.msra.gmra.mrb[10].mxu0 %vm627_vm2, %v5612_v62  ;;  %v1612_v1 = vsel %vm1608_vm5, %v1605_v63, %v1607_v0 }
 0x480   : > { %1849 = vmatpush1.msra.mxu0 %v1584_v45  ;;  %1690 = vmatprep.subr.mxu1 %v1612_v1 }
 0x481   : > { %1691 = vmatpush1.msra.mxu1 %v1611_v2  ;;  %1912 = vmatprep.mubr.f32.mxu0 %v6172_v48 }
 0x482   : > { %5611 = vmatmul.mubr.msk.f32.vlgmr.msra.gmra.mrb[0].mxu1 %vm627_vm2, %v1592_v61  ;;  %5772 = vmatprep.subr.mxu1 %v6172_v48 }
 0x483   : > { %5615 = vmatmul.mubr.msk.f32.vlgmr.msra.gmra.mrb[12].mxu0 %vm627_vm2, %v5612_v62  ;;  %5773 = vmatpush3.msra.mxu1 %v1586_v52 }
 0x484   : > { %5774 = vmatprep.mubr.msk.f32.mxu1 %vm6174_vm3, %v6172_v48  ;;  %2096 = vmatprep.mubr.f32.mxu0 %v6172_v48 }
 0x486   : > { %5775 = vmatmul.mubr.msk.f32.vlgmr.msra.gmra.mrb[10].mxu1 %vm627_vm2, %v5612_v62 }
 0x487   : > { %2173 = vmatprep.mubr.f32.mxu1 %v6172_v48 }
 0x48d   : > { %v1772_v3 = vpop.permute.xlu1 %1771 }
 0x552   : > { %v1843_v4 = vpop.f32.mrb[10].mxu0 }
 0x553   : > { %v1844_v17 = vadd.f32 %v1843_v4, %v1772_v3  ;;  %v1845_v21 = vpop.f32.mrb[11].mxu0 }
 0x554   : > { %v1846_v28 = vadd.f32 %v1845_v21, %v1772_v3 }
 0x555   : > { %v1989_v24 = vadd.f32 %v1844_v17, %v6426_v50  ;;  %v5617_v50 = vld [vmem:[%s6833_s2 + $0x20] sm:$0xff] }
 0x556   : > { %v1914_v5 = vpop.f32.mrb[12].mxu0  ;;  %v1990_v10 = vadd.f32 %v1846_v28, %v6423_v49 }
 0x557   : > { %v1915_v8 = vadd.f32 %v1914_v5, %v1772_v3  ;;  %v1916_v9 = vpop.f32.mrb[13].mxu0  ;;  %2008 = vrot.lane.b32.xlu0 %v1989_v24, %s6178_s26 }
 0x558   : > { %v1917_v18 = vadd.f32 %v1916_v9, %v1772_v3 }
 0x559   : > { %v1991_v11 = vadd.f32 %v1915_v8, %v6441_v56  ;;  %v1985_v13 = vpop.f32.mrb[10].mxu1 }
 0x55a   : > { %v5776_v14 = vpop.f32.mrb[11].mxu1  ;;  %v1986_v19 = vadd.f32 %v1985_v13, %v1772_v3  ;;  %v1992_v49 = vadd.f32 %v1917_v18, %v6438_v55 }
 0x55b   : > { %2012 = vrot.lane.b32.xlu1 %v1991_v11, %s6178_s26  ;;  %2010 = vrot.lane.b32.xlu0 %v1990_v10, %s6178_s26 }
 0x55c   : > { %v1993_v56 = vadd.f32 %v1986_v19, %v6432_v54 }
 0x55f   : > { %1999 = vrot.lane.b32.xlu1 %v5617_v50, %s6176_s28  ;;  %2001 = vrot.lane.b32.xlu0 %v5618_v15, %s6176_s28 }
 0x563   : > { %2014 = vrot.lane.b32.xlu1 %v1992_v49, %s6178_s26  ;;  %2016 = vrot.lane.b32.xlu0 %v1993_v56, %s6178_s26 }
 0x567   : > { %2504 = vperm.xlu1 %5953, %v5632_v20   ;;  %2499 = vperm.xlu0 %5954, %v5631_v22  }
 0x5c9   : > { %v2009_v23 = vpop.permute.xlu0 %2008 }
 0x5cd   : > { %v2013_v25 = vpop.permute.xlu1 %2012  ;;  %v2011_v55 = vpop.permute.xlu0 %2010 }
 0x5ce   : > { %v6516_v54 = vsel %vm2018_vm6, %v2009_v23, %v2011_v55  ;;  %v6519_v26 = vsel %vm2018_vm6, %v2011_v55, %v2013_v25 }
 0x5cf   : > { %2032 = vmatprep.subr.mxu0 %v6519_v26 }
 0x5d0   : > { %2033 = vmatpush1.msra.mxu0 %v6516_v54 }
 0x5d1   : > { %v2000_v27 = vpop.permute.xlu1 %1999  ;;  %v2002_v29 = vpop.permute.xlu0 %2001 }
 0x5d2   : > { %5619 = vmatmul.mubr.msk.f32.vlgmr.msra.gmra.mrb[14].mxu0 %vm627_vm2, %v2000_v27 }
 0x5d3   : > { %2102 = vmatprep.mubr.f32.mxu0 %v6172_v48 }
 0x5d5   : > { %v2015_v30 = vpop.permute.xlu1 %2014  ;;  %v6525_v31 = vpop.permute.xlu0 %2016 }
 0x5d6   : > { %v6528_v32 = vsel %vm2018_vm6, %v2013_v25, %v2015_v30  ;;  %5620 = vmatmul.mubr.msk.f32.gmra.mrb[16].mxu0 %vm627_vm2, %v2002_v29  ;;  %5777 = vmatprep.subr.mxu0 %v6525_v31  ;;  %v6534_v33 = vsel %vm2018_vm6, %v2015_v30, %v6525_v31 }
 0x5d7   : > { %2109 = vmatprep.subr.mxu1 %v6534_v33  ;;  %5778 = vmatpush3.msra.mxu0 %v6525_v31 }
 0x5d8   : > { %5779 = vmatprep.mubr.msk.f32.mxu0 %vm627_vm2, %v2000_v27  ;;  %2110 = vmatpush1.msra.mxu1 %v6528_v32 }
 0x5d9   : > { %2265 = vmatprep.subr.mxu0 %v1990_v10  ;;  %5621 = vmatmul.mubr.msk.f32.vlgmr.msra.gmra.mrb[12].mxu1 %vm627_vm2, %v2000_v27 }
 0x5da   : > { %2342 = vmatprep.subr.mxu1 %v1992_v49  ;;  %5780 = vmatmul.mubr.msk.f32.vlgmr.msra.gmra.mrb[18].mxu0 %vm627_vm2, %v2002_v29 }
 0x5db   : > { %2266 = vmatpush1.msra.mxu0 %v1989_v24  ;;  %2343 = vmatpush1.msra.mxu1 %v1991_v11 }
 0x5dc   : > { %5782 = vmatprep.subr.mxu0 %v1993_v56  ;;  %2179 = vmatprep.mubr.f32.mxu1 %v6172_v48 }
 0x5dd   : > { %5622 = vmatmul.mubr.msk.f32.gmra.mrb[14].mxu1 %vm627_vm2, %v2002_v29  ;;  %2329 = vmatprep.mubr.f32.mxu0 %v6172_v48  ;;  %v5641_v29 = vld [vmem:[%s6836_s5 + $0x10] sm:$0xff] }
 0x5de   : > { %5625 = vmatmul.mubr.msk.f32.vlgmr.msra.gmra.mrb[14].mxu0 %vm627_vm2, %v5617_v50  ;;  %2406 = vmatprep.mubr.f32.mxu1 %v6172_v48 }
 0x5df   : > { %5783 = vmatpush3.msra.mxu0 %v1993_v56  ;;  %2335 = vmatprep.mubr.f32.mxu0 %v6172_v48 }
 0x5e1   : > { %5627 = vmatmul.mubr.msk.f32.vlgmr.msra.gmra.mrb[12].mxu1 %vm627_vm2, %v5617_v50 }
 0x5e2   : > { %5626 = vmatmul.mubr.msk.f32.gmra.mrb[16].mxu0 %vm627_vm2, %v5618_v15  ;;  %2412 = vmatprep.mubr.f32.mxu1 %v6172_v48 }
 0x5e3   : > { %5784 = vmatprep.mubr.msk.f32.mxu0 %vm627_vm2, %v5617_v50 }
 0x5e5   : > { %5628 = vmatmul.mubr.msk.f32.gmra.mrb[14].mxu1 %vm627_vm2, %v5618_v15 }
 0x5e6   : > { %5785 = vmatmul.mubr.msk.f32.vlgmr.msra.gmra.mrb[18].mxu0 %vm627_vm2, %v5618_v15  ;;  %2720 = vmatprep.mubr.f32.mxu1 %v6172_v48  ;;  %v2505_v36 = vpop.permute.xlu1 %2504  ;;  %v2500_v61 = vpop.permute.xlu0 %2499 }
 0x5e7   : > { %2649 = vmatprep.mubr.f32.mxu0 %v6172_v48 }
 0x6b1   : > { %v2331_v34 = vpop.f32.mrb[14].mxu0 }
 0x6b2   : > { %v2333_v35 = vpop.f32.mrb[15].mxu0  ;;  %v2507_v62 = vadd.f32 %v2500_v61, %v2331_v34 }
 0x6b3   : > { %v2508_v63 = vadd.f32 %v2500_v61, %v2333_v35 }
 0x6b4   : > { %v2408_v37 = vpop.f32.mrb[12].mxu1 }
 0x6b5   : > { %v2337_v38 = vpop.f32.mrb[16].mxu0  ;;  %v2410_v39 = vpop.f32.mrb[13].mxu1  ;;  %v2509_v0 = vadd.f32 %v2500_v61, %v2408_v37 }
 0x6b6   : > { %v2512_v40 = vadd.f32 %v2505_v36, %v2337_v38  ;;  %v2339_v41 = vpop.f32.mrb[17].mxu0  ;;  %v2510_v1 = vadd.f32 %v2500_v61, %v2410_v39 }
 0x6b7   : > { %v2513_v42 = vadd.f32 %v2505_v36, %v2339_v41 }
 0x6b8   : > { %v5633_v43 = vmul.f32 -1.442695, %v2512_v40  ;;  %v2414_v44 = vpop.f32.mrb[14].mxu1  ;;  %v5640_v40 = vld [vmem:[%s6835_s4 + $0x10] sm:$0xff] }
 0x6b9   : > { %v5634_v45 = vmul.f32 -1.442695, %v2513_v42  ;;  %v2514_v46 = vadd.f32 %v2505_v36, %v2414_v44  ;;  %v2416_v47 = vpop.f32.mrb[15].mxu1  ;;  %v5786_v52 = vpop.f32.mrb[18].mxu0 }
 0x6ba   : > { %6015 = vpow2.f32 %v5633_v43  ;;  %v2515_v53 = vadd.f32 %v2505_v36, %v2416_v47  ;;  %v2516_v57 = vadd.f32 %v5786_v52, %v2505_v36  ;;  %v2485_v58 = vpop.f32.mrb[19].mxu0 }
 0x6bb   : > { %6017 = vpow2.f32 %v5634_v45  ;;  %v5635_v59 = vmul.f32 -1.442695, %v2514_v46  ;;  %v2511_v17 = vadd.f32 %v2500_v61, %v2485_v58 }
 0x6bc   : > { %v5636_v16 = vmul.f32 -1.442695, %v2515_v53  ;;  %v5637_v60 = vmul.f32 -1.442695, %v2516_v57 }
 0x6bd   : > { %6019 = vpow2.f32 %v5635_v59 }
 0x6be   : > { %6021 = vpow2.f32 %v5636_v16 }
 0x6bf   : > { %6023 = vpow2.f32 %v5637_v60 }
 0x6c0   : > { %6025 = vtanh.f32 %v2507_v62 }
 0x6c1   : > { %6027 = vtanh.f32 %v2508_v63 }
 0x6c2   : > { %6029 = vtanh.f32 %v2509_v0 }
 0x6c3   : > { %6031 = vtanh.f32 %v2510_v1 }
 0x6c4   : > { %v6016_v2 = vpop.eup %6015 }
 0x6c5   : > { %v6018_v3 = vpop.eup %6017  ;;  %v2537_v4 = vadd.f32 1.0, %v6016_v2  ;;  %v5660_v2 = vld [vmem:[%s6834_s3 + $0x38] sm:$0xff] }
 0x6c6   : > { %v2538_v21 = vadd.f32 1.0, %v6018_v3 }
 0x6c7   : > { %v6020_v24 = vpop.eup %6019  ;;  %6033 = vrcp.f32 %v2537_v4 }
 0x6c8   : > { %v6022_v28 = vpop.eup %6021  ;;  %6035 = vrcp.f32 %v2538_v21  ;;  %v2539_v5 = vadd.f32 1.0, %v6020_v24 }
 0x6c9   : > { %v6024_v8 = vpop.eup %6023  ;;  %v2540_v9 = vadd.f32 1.0, %v6022_v28  ;;  %6037 = vtanh.f32 %v2511_v17 }
 0x6ca   : > { %6039 = vrcp.f32 %v2539_v5  ;;  %v2541_v10 = vadd.f32 1.0, %v6024_v8  ;;  %v6026_v11 = vpop.eup %6025 }
 0x6cb   : > { %6041 = vrcp.f32 %v2540_v9  ;;  %v6028_v13 = vpop.eup %6027 }
 0x6cc   : > { %6043 = vrcp.f32 %v2541_v10  ;;  %v6030_v14 = vpop.eup %6029 }
 0x6cd   : > { %v6032_v50 = vpop.eup %6031 }
 0x6d1   : > { %v6034_v15 = vpop.eup %6033 }
 0x6d2   : > { %v6036_v18 = vpop.eup %6035  ;;  %v2552_v19 = vmul.f32 %v6034_v15, %v6026_v11 }
 0x6d3   : > { %v6038_v49 = vpop.eup %6037  ;;  %v2553_v56 = vmul.f32 %v6036_v18, %v6028_v13 }
 0x6d4   : > { %v6040_v20 = vpop.eup %6039 }
 0x6d5   : > { %v6042_v22 = vpop.eup %6041  ;;  %v2554_v23 = vmul.f32 %v6040_v20, %v6030_v14 }
 0x6d6   : > { %v6044_v25 = vpop.eup %6043  ;;  %v2555_v55 = vmul.f32 %v6042_v22, %v6032_v50 }
 0x6d7   : > { %v2556_v27 = vmul.f32 %v6044_v25, %v6038_v49 }
 0x6d8   : > { %2570 = vrot.lane.b32.xlu1 %v2555_v55, %s6179_s21 }
 0x6d9   : > { %2572 = vrot.lane.b32.xlu0 %v2556_v27, %s6179_s21 }
 0x6dc   : > { %2568 = vrot.lane.b32.xlu1 %v2554_v23, %s6179_s21 }
 0x6dd   : > { %2557 = vrot.lane.b32.xlu0 %v6465_v51, %s6180_s22 }
 0x6e0   : > { %2566 = vrot.lane.b32.xlu1 %v2553_v56, %s6179_s21 }
 0x6e1   : > { %2564 = vrot.lane.b32.xlu0 %v2552_v19, %s6179_s21 }
 0x6e4   : > { %2737 = vperm.xlu1 %5953, %v5641_v29  }
 0x74a   : > { %v2571_v30 = vpop.permute.xlu1 %2570 }
 0x74b   : > { %v2573_v34 = vpop.permute.xlu0 %2572 }
 0x74c   : > { %v2578_v35 = vsel %vm2574_vm7, %v2571_v30, %v2573_v34 }
 0x74d   : > { %2656 = vmatprep.subr.mxu1 %v2578_v35 }
 0x74e   : > { %v2569_v36 = vpop.permute.xlu1 %2568 }
 0x74f   : > { %v2558_v37 = vpop.permute.xlu0 %2557  ;;  %v2577_v38 = vsel %vm2574_vm7, %v2569_v36, %v2571_v30 }
 0x750   : > { %2657 = vmatpush1.msra.mxu1 %v2577_v38 }
 0x751   : > { %5639 = vmatmul.mubr.msk.f32.vlgmr.msra.gmra.mrb[0].mxu1 %vm627_vm2, %v2558_v37  ;;  %2743 = vmatprep.subr.mxu1 %v2553_v56 }
 0x752   : > { %v2567_v39 = vpop.permute.xlu1 %2566  ;;  %2744 = vmatpush1.msra.mxu1 %v2552_v19  ;;  %2807 = vmatprep.mubr.f32.mxu1 %v6172_v48 }
 0x753   : > { %v2565_v41 = vpop.permute.xlu0 %2564  ;;  %2814 = vmatprep.subr.mxu1 %v2555_v55  ;;  %v2576_v42 = vsel %vm2574_vm7, %v2567_v39, %v2569_v36 }
 0x754   : > { %v2575_v43 = vsel %vm2574_vm7, %v2565_v41, %v2567_v39  ;;  %2585 = vmatprep.subr.mxu0 %v2576_v42 }
 0x755   : > { %2586 = vmatpush1.msra.mxu0 %v2575_v43  ;;  %5642 = vmatmul.mubr.msk.f32.vlgmr.msra.gmra.mrb[16].mxu1 %vm627_vm2, %v5640_v40 }
 0x756   : > { %2815 = vmatpush1.msra.mxu1 %v2554_v23  ;;  %5638 = vmatmul.mubr.msk.f32.vlgmr.msra.gmra.mrb[0].mxu0 %vm627_vm2, %v2558_v37 }
 0x757   : > { %5787 = vmatprep.subr.mxu0 %v6172_v48  ;;  %2878 = vmatprep.mubr.f32.mxu1 %v6172_v48 }
 0x758   : > { %5788 = vmatpush3.msra.mxu0 %v2556_v27  ;;  %5789 = vmatprep.mubr.msk.f32.mxu0 %vm6174_vm3, %v6172_v48 }
 0x759   : > { %5643 = vmatmul.mubr.msk.f32.vlgmr.msra.gmra.mrb[18].mxu1 %vm627_vm2, %v5640_v40 }
 0x75a   : > { %5790 = vmatmul.mubr.msk.f32.vlgmr.msra.gmra.mrb[20].mxu0 %vm627_vm2, %v5640_v40  ;;  %3061 = vmatprep.mubr.f32.mxu1 %v6172_v48 }
 0x75b   : > { %3138 = vmatprep.mubr.f32.mxu0 %v6172_v48 }
 0x763   : > { %v2738_v44 = vpop.permute.xlu1 %2737 }
 0x828   : > { %v2809_v45 = vpop.f32.mrb[16].mxu1 }
 0x829   : > { %v2810_v46 = vadd.f32 %v2809_v45, %v2738_v44  ;;  %v2811_v47 = vpop.f32.mrb[17].mxu1 }
 0x82a   : > { %v2812_v53 = vadd.f32 %v2811_v47, %v2738_v44 }
 0x82b   : > { %v2955_v52 = vadd.f32 %v2810_v46, %v6516_v54  ;;  %v5645_v54 = vld [vmem:[%s6833_s2 + $0x30] sm:$0xff] }
 0x82c   : > { %v2880_v57 = vpop.f32.mrb[18].mxu1  ;;  %v2956_v61 = vadd.f32 %v2812_v53, %v6519_v26  ;;  %v5646_v26 = vld [vmem:[%s6833_s2 + $0x38] sm:$0xff] }
 0x82d   : > { %v2881_v58 = vadd.f32 %v2880_v57, %v2738_v44  ;;  %v2882_v59 = vpop.f32.mrb[19].mxu1  ;;  %v2951_v16 = vpop.f32.mrb[20].mxu0  ;;  %2974 = vrot.lane.b32.xlu0 %v2955_v52, %s6171_s14 }
 0x82e   : > { %v5791_v60 = vpop.f32.mrb[21].mxu0  ;;  %v2883_v63 = vadd.f32 %v2882_v59, %v2738_v44  ;;  %v2952_v1 = vadd.f32 %v2951_v16, %v2738_v44 }
 0x82f   : > { %v2957_v62 = vadd.f32 %v2881_v58, %v6528_v32 }
 0x830   : > { %v2958_v0 = vadd.f32 %v2883_v63, %v6534_v33  ;;  %v2959_v32 = vadd.f32 %v2952_v1, %v6525_v31  ;;  %v5659_v33 = vld [vmem:[%s6834_s3 + $0x30] sm:$0xff] }
 0x831   : > { %2978 = vrot.lane.b32.xlu1 %v2957_v62, %s6171_s14  ;;  %2976 = vrot.lane.b32.xlu0 %v2956_v61, %s6171_s14 }
 0x835   : > { %2965 = vrot.lane.b32.xlu1 %v5645_v54, %s6176_s28  ;;  %2980 = vrot.lane.b32.xlu0 %v2958_v0, %s6171_s14 }
 0x839   : > { %2982 = vrot.lane.b32.xlu1 %v2959_v32, %s6171_s14  ;;  %2967 = vrot.lane.b32.xlu0 %v5646_v26, %s6176_s28  ;;  %s6181_s14 = smov 122  }
 0x83d   : > { %3469 = vperm.xlu1 %5953, %v5660_v2   ;;  %3464 = vperm.xlu0 %5954, %v5659_v33  }
 0x89f   : > { %v2975_v3 = vpop.permute.xlu0 %2974 }
 0x8a3   : > { %v2979_v4 = vpop.permute.xlu1 %2978  ;;  %v2977_v17 = vpop.permute.xlu0 %2976 }
 0x8a4   : > { %v6604_v21 = vsel %vm524_vm0, %v2975_v3, %v2977_v17  ;;  %v6607_v31 = vsel %vm524_vm0, %v2977_v17, %v2979_v4 }
 0x8a5   : > { %2997 = vmatprep.subr.mxu1 %v6607_v31 }
 0x8a6   : > { %2998 = vmatpush1.msra.mxu1 %v6604_v21 }
 0x8a7   : > { %v2966_v24 = vpop.permute.xlu1 %2965  ;;  %v2981_v28 = vpop.permute.xlu0 %2980 }
 0x8a8   : > { %5647 = vmatmul.mubr.msk.f32.vlgmr.msra.gmra.mrb[20].mxu1 %vm627_vm2, %v2966_v24  ;;  %v6622_v10 = vsel %vm524_vm0, %v2979_v4, %v2981_v28 }
 0x8a9   : > { %3067 = vmatprep.mubr.f32.mxu1 %v6172_v48 }
 0x8ab   : > { %v6613_v5 = vpop.permute.xlu1 %2982  ;;  %v2968_v8 = vpop.permute.xlu0 %2967 }
 0x8ac   : > { %5648 = vmatmul.mubr.msk.f32.gmra.mrb[22].mxu1 %vm627_vm2, %v2968_v8  ;;  %5792 = vmatprep.subr.mxu1 %v6613_v5  ;;  %v6619_v9 = vsel %vm524_vm0, %v2981_v28, %v6613_v5  ;;  %v5669_v28 = vld [vmem:[%s6836_s5 + $0x18] sm:$0xff] }
 0x8ad   : > { %3074 = vmatprep.subr.mxu0 %v6619_v9  ;;  %5793 = vmatpush3.msra.mxu1 %v6613_v5 }
 0x8ae   : > { %5794 = vmatprep.mubr.msk.f32.mxu1 %vm627_vm2, %v2966_v24  ;;  %3075 = vmatpush1.msra.mxu0 %v6622_v10 }
 0x8af   : > { %3230 = vmatprep.subr.mxu1 %v2956_v61  ;;  %5649 = vmatmul.mubr.msk.f32.vlgmr.msra.gmra.mrb[22].mxu0 %vm627_vm2, %v2966_v24 }
 0x8b0   : > { %3307 = vmatprep.subr.mxu0 %v2958_v0  ;;  %5795 = vmatmul.mubr.msk.f32.vlgmr.msra.gmra.mrb[24].mxu1 %vm627_vm2, %v2968_v8 }
 0x8b1   : > { %3231 = vmatpush1.msra.mxu1 %v2955_v52  ;;  %3308 = vmatpush1.msra.mxu0 %v2957_v62 }
 0x8b2   : > { %5797 = vmatprep.subr.mxu1 %v2959_v32  ;;  %3144 = vmatprep.mubr.f32.mxu0 %v6172_v48 }
 0x8b3   : > { %5650 = vmatmul.mubr.msk.f32.gmra.mrb[24].mxu0 %vm627_vm2, %v2968_v8  ;;  %3294 = vmatprep.mubr.f32.mxu1 %v6172_v48 }
 0x8b4   : > { %5653 = vmatmul.mubr.msk.f32.vlgmr.msra.gmra.mrb[20].mxu1 %vm627_vm2, %v5645_v54  ;;  %3371 = vmatprep.mubr.f32.mxu0 %v6172_v48 }
 0x8b5   : > { %5798 = vmatpush3.msra.mxu1 %v2959_v32  ;;  %3300 = vmatprep.mubr.f32.mxu1 %v6172_v48 }
 0x8b7   : > { %5655 = vmatmul.mubr.msk.f32.vlgmr.msra.gmra.mrb[22].mxu0 %vm627_vm2, %v5645_v54 }
 0x8b8   : > { %5654 = vmatmul.mubr.msk.f32.gmra.mrb[22].mxu1 %vm627_vm2, %v5646_v26  ;;  %3377 = vmatprep.mubr.f32.mxu0 %v6172_v48 }
 0x8b9   : > { %5799 = vmatprep.mubr.msk.f32.mxu1 %vm627_vm2, %v5645_v54 }
 0x8bb   : > { %5656 = vmatmul.mubr.msk.f32.gmra.mrb[24].mxu0 %vm627_vm2, %v5646_v26 }
 0x8bc   : > { %5800 = vmatmul.mubr.msk.f32.vlgmr.msra.gmra.mrb[24].mxu1 %vm627_vm2, %v5646_v26  ;;  %3614 = vmatprep.mubr.f32.mxu0 %v6172_v48  ;;  %v3470_v14 = vpop.permute.xlu1 %3469  ;;  %v3465_v38 = vpop.permute.xlu0 %3464 }
 0x8bd   : > { %3685 = vmatprep.mubr.f32.mxu1 %v6172_v48 }
 0x987   : > { %v3296_v11 = vpop.f32.mrb[20].mxu1 }
 0x988   : > { %v3298_v13 = vpop.f32.mrb[21].mxu1  ;;  %v3472_v39 = vadd.f32 %v3465_v38, %v3296_v11 }
 0x989   : > { %v3473_v40 = vadd.f32 %v3465_v38, %v3298_v13 }
 0x98a   : > { %v3373_v50 = vpop.f32.mrb[22].mxu0 }
 0x98b   : > { %v3302_v15 = vpop.f32.mrb[22].mxu1  ;;  %v3375_v18 = vpop.f32.mrb[23].mxu0  ;;  %v3474_v41 = vadd.f32 %v3465_v38, %v3373_v50 }
 0x98c   : > { %v3477_v19 = vadd.f32 %v3470_v14, %v3302_v15  ;;  %v3304_v49 = vpop.f32.mrb[23].mxu1  ;;  %v3475_v42 = vadd.f32 %v3465_v38, %v3375_v18  ;;  %v5668_v18 = vld [vmem:[%s6835_s4 + $0x18] sm:$0xff] }
 0x98d   : > { %v3478_v56 = vadd.f32 %v3470_v14, %v3304_v49 }
 0x98e   : > { %v5661_v20 = vmul.f32 -1.442695, %v3477_v19  ;;  %v3379_v22 = vpop.f32.mrb[24].mxu0 }
 0x98f   : > { %v5662_v23 = vmul.f32 -1.442695, %v3478_v56  ;;  %v3479_v25 = vadd.f32 %v3470_v14, %v3379_v22  ;;  %v3381_v55 = vpop.f32.mrb[25].mxu0  ;;  %v5801_v27 = vpop.f32.mrb[24].mxu1 }
 0x990   : > { %6045 = vpow2.f32 %v5661_v20  ;;  %v3480_v29 = vadd.f32 %v3470_v14, %v3381_v55  ;;  %v3481_v30 = vadd.f32 %v5801_v27, %v3470_v14  ;;  %v3450_v34 = vpop.f32.mrb[25].mxu1 }
 0x991   : > { %6047 = vpow2.f32 %v5662_v23  ;;  %v5663_v35 = vmul.f32 -1.442695, %v3479_v25  ;;  %v3476_v46 = vadd.f32 %v3465_v38, %v3450_v34 }
 0x992   : > { %v5664_v36 = vmul.f32 -1.442695, %v3480_v29  ;;  %v5665_v37 = vmul.f32 -1.442695, %v3481_v30 }
 0x993   : > { %6049 = vpow2.f32 %v5663_v35 }
 0x994   : > { %6051 = vpow2.f32 %v5664_v36 }
 0x995   : > { %6053 = vpow2.f32 %v5665_v37 }
 0x996   : > { %6055 = vtanh.f32 %v3472_v39 }
 0x997   : > { %6057 = vtanh.f32 %v3473_v40  ;;  %v5674_v40 = vld [vmem:[%s6833_s2 + $0x48] sm:$0xff] }
 0x998   : > { %6059 = vtanh.f32 %v3474_v41 }
 0x999   : > { %6061 = vtanh.f32 %v3475_v42 }
 0x99a   : > { %v6046_v43 = vpop.eup %6045 }
 0x99b   : > { %v6048_v44 = vpop.eup %6047  ;;  %v3502_v45 = vadd.f32 1.0, %v6046_v43  ;;  %v5688_v43 = vld [vmem:[%s6834_s3 + $0x48] sm:$0xff] }
 0x99c   : > { %v3503_v47 = vadd.f32 1.0, %v6048_v44  ;;  %v5687_v44 = vld [vmem:[%s6834_s3 + $0x40] sm:$0xff] }
 0x99d   : > { %v6050_v52 = vpop.eup %6049  ;;  %6063 = vrcp.f32 %v3502_v45 }
 0x99e   : > { %v6052_v53 = vpop.eup %6051  ;;  %6065 = vrcp.f32 %v3503_v47  ;;  %v3504_v57 = vadd.f32 1.0, %v6050_v52 }
 0x99f   : > { %v6054_v58 = vpop.eup %6053  ;;  %v3505_v59 = vadd.f32 1.0, %v6052_v53  ;;  %6067 = vtanh.f32 %v3476_v46 }
 0x9a0   : > { %6069 = vrcp.f32 %v3504_v57  ;;  %v3506_v16 = vadd.f32 1.0, %v6054_v58  ;;  %v6056_v60 = vpop.eup %6055 }
 0x9a1   : > { %6071 = vrcp.f32 %v3505_v59  ;;  %v6058_v61 = vpop.eup %6057 }
 0x9a2   : > { %6073 = vrcp.f32 %v3506_v16  ;;  %v6060_v62 = vpop.eup %6059 }
 0x9a3   : > { %v6062_v63 = vpop.eup %6061 }
 0x9a7   : > { %v6064_v54 = vpop.eup %6063 }
 0x9a8   : > { %v6066_v0 = vpop.eup %6065  ;;  %v3517_v1 = vmul.f32 %v6064_v54, %v6056_v60 }
 0x9a9   : > { %v6068_v26 = vpop.eup %6067  ;;  %v3518_v32 = vmul.f32 %v6066_v0, %v6058_v61 }
 0x9aa   : > { %v6070_v2 = vpop.eup %6069 }
 0x9ab   : > { %v6072_v33 = vpop.eup %6071  ;;  %3531 = vrot.lane.b32.xlu1 %v3518_v32, %s6181_s14  ;;  %v3519_v3 = vmul.f32 %v6070_v2, %v6060_v62 }
 0x9ac   : > { %v6074_v4 = vpop.eup %6073  ;;  %v3520_v17 = vmul.f32 %v6072_v33, %v6062_v63 }
 0x9ad   : > { %3533 = vrot.lane.b32.xlu0 %v3519_v3, %s6181_s14  ;;  %v3521_v24 = vmul.f32 %v6074_v4, %v6068_v26 }
 0x9af   : > { %3529 = vrot.lane.b32.xlu1 %v3517_v1, %s6181_s14 }
 0x9b1   : > { %3522 = vrot.lane.b32.xlu0 %v6465_v51, %s6182_s23 }
 0x9b3   : > { %3535 = vrot.lane.b32.xlu1 %v3520_v17, %s6181_s14 }
 0x9b5   : > { %3537 = vrot.lane.b32.xlu0 %v3521_v24, %s6181_s14 }
 0x9b7   : > { %3702 = vperm.xlu1 %5953, %v5669_v28  }
 0xa1d   : > { %v3532_v8 = vpop.permute.xlu1 %3531 }
 0xa1f   : > { %v3534_v11 = vpop.permute.xlu0 %3533 }
 0xa20   : > { %v3541_v13 = vsel %vm3539_vm8, %v3532_v8, %v3534_v11 }
 0xa21   : > { %3550 = vmatprep.subr.mxu0 %v3541_v13  ;;  %v3530_v14 = vpop.permute.xlu1 %3529 }
 0xa22   : > { %v3540_v50 = vsel %vm3539_vm8, %v3530_v14, %v3532_v8 }
 0xa23   : > { %v3523_v15 = vpop.permute.xlu0 %3522  ;;  %3551 = vmatpush1.msra.mxu0 %v3540_v50 }
 0xa24   : > { %5666 = vmatmul.mubr.msk.f32.vlgmr.msra.gmra.mrb[0].mxu0 %vm627_vm2, %v3523_v15  ;;  %3708 = vmatprep.subr.mxu0 %v3518_v32 }
 0xa25   : > { %3709 = vmatpush1.msra.mxu0 %v3517_v1  ;;  %3772 = vmatprep.mubr.f32.mxu0 %v6172_v48  ;;  %v3536_v19 = vpop.permute.xlu1 %3535 }
 0xa26   : > { %3779 = vmatprep.subr.mxu0 %v3520_v17  ;;  %v3542_v20 = vsel %vm3539_vm8, %v3534_v11, %v3536_v19 }
 0xa27   : > { %v3538_v49 = vpop.permute.xlu0 %3537 }
 0xa28   : > { %5670 = vmatmul.mubr.msk.f32.vlgmr.msra.gmra.mrb[26].mxu0 %vm627_vm2, %v5668_v18  ;;  %v3543_v56 = vsel %vm3539_vm8, %v3536_v19, %v3538_v49 }
 0xa29   : > { %3780 = vmatpush1.msra.mxu0 %v3519_v3  ;;  %3621 = vmatprep.subr.mxu1 %v3543_v56 }
 0xa2a   : > { %3622 = vmatpush1.msra.mxu1 %v3542_v20  ;;  %3843 = vmatprep.mubr.f32.mxu0 %v6172_v48 }
 0xa2b   : > { %5667 = vmatmul.mubr.msk.f32.vlgmr.msra.gmra.mrb[0].mxu1 %vm627_vm2, %v3523_v15  ;;  %5802 = vmatprep.subr.mxu1 %v6172_v48 }
 0xa2c   : > { %5671 = vmatmul.mubr.msk.f32.vlgmr.msra.gmra.mrb[28].mxu0 %vm627_vm2, %v5668_v18  ;;  %5803 = vmatpush3.msra.mxu1 %v3521_v24 }
 0xa2d   : > { %5804 = vmatprep.mubr.msk.f32.mxu1 %vm6174_vm3, %v6172_v48  ;;  %4026 = vmatprep.mubr.f32.mxu0 %v6172_v48 }
 0xa2f   : > { %5805 = vmatmul.mubr.msk.f32.vlgmr.msra.gmra.mrb[26].mxu1 %vm627_vm2, %v5668_v18 }
 0xa30   : > { %4103 = vmatprep.mubr.f32.mxu1 %v6172_v48 }
 0xa36   : > { %v3703_v22 = vpop.permute.xlu1 %3702 }
 0xafb   : > { %v3774_v23 = vpop.f32.mrb[26].mxu0 }
 0xafc   : > { %v3775_v25 = vadd.f32 %v3774_v23, %v3703_v22  ;;  %v3776_v55 = vpop.f32.mrb[27].mxu0 }
 0xafd   : > { %v3777_v29 = vadd.f32 %v3776_v55, %v3703_v22 }
 0xafe   : > { %v3920_v27 = vadd.f32 %v3775_v25, %v6604_v21  ;;  %v5673_v21 = vld [vmem:[%s6833_s2 + $0x40] sm:$0xff] }
 0xaff   : > { %v3845_v30 = vpop.f32.mrb[28].mxu0  ;;  %v3921_v36 = vadd.f32 %v3777_v29, %v6607_v31 }
 0xb00   : > { %v3846_v34 = vadd.f32 %v3845_v30, %v3703_v22  ;;  %v3847_v35 = vpop.f32.mrb[29].mxu0  ;;  %3939 = vrot.lane.b32.xlu0 %v3920_v27, %s6175_s25 }
 0xb01   : > { %v3848_v41 = vadd.f32 %v3847_v35, %v3703_v22 }
 0xb02   : > { %v3922_v37 = vadd.f32 %v3846_v34, %v6622_v10  ;;  %v3916_v38 = vpop.f32.mrb[26].mxu1 }
 0xb03   : > { %v5806_v39 = vpop.f32.mrb[27].mxu1  ;;  %v3917_v42 = vadd.f32 %v3916_v38, %v3703_v22  ;;  %v3923_v31 = vadd.f32 %v3848_v41, %v6619_v9 }
 0xb04   : > { %3943 = vrot.lane.b32.xlu1 %v3922_v37, %s6175_s25  ;;  %3941 = vrot.lane.b32.xlu0 %v3921_v36, %s6175_s25 }
 0xb05   : > { %v3924_v10 = vadd.f32 %v3917_v42, %v6613_v5 }
 0xb08   : > { %3930 = vrot.lane.b32.xlu1 %v5673_v21, %s6176_s28  ;;  %3932 = vrot.lane.b32.xlu0 %v5674_v40, %s6176_s28 }
 0xb0c   : > { %3945 = vrot.lane.b32.xlu1 %v3923_v31, %s6175_s25  ;;  %3947 = vrot.lane.b32.xlu0 %v3924_v10, %s6175_s25  ;;  %s6183_s25 = smov 96  }
 0xb10   : > { %4434 = vperm.xlu1 %5953, %v5688_v43   ;;  %4429 = vperm.xlu0 %5954, %v5687_v44  }
 0xb72   : > { %v3940_v45 = vpop.permute.xlu0 %3939 }
 0xb76   : > { %v3944_v46 = vpop.permute.xlu1 %3943  ;;  %v3942_v47 = vpop.permute.xlu0 %3941 }
 0xb77   : > { %v6692_v9 = vsel %vm1048_vm4, %v3940_v45, %v3942_v47  ;;  %v6695_v5 = vsel %vm1048_vm4, %v3942_v47, %v3944_v46 }
 0xb78   : > { %3962 = vmatprep.subr.mxu0 %v6695_v5 }
 0xb79   : > { %3963 = vmatpush1.msra.mxu0 %v6692_v9 }
 0xb7a   : > { %v3931_v52 = vpop.permute.xlu1 %3930  ;;  %v3933_v53 = vpop.permute.xlu0 %3932 }
 0xb7b   : > { %5675 = vmatmul.mubr.msk.f32.vlgmr.msra.gmra.mrb[30].mxu0 %vm627_vm2, %v3931_v52 }
 0xb7c   : > { %4032 = vmatprep.mubr.f32.mxu0 %v6172_v48 }
 0xb7e   : > { %v3946_v57 = vpop.permute.xlu1 %3945  ;;  %v6701_v58 = vpop.permute.xlu0 %3947 }
 0xb7f   : > { %v6704_v59 = vsel %vm1048_vm4, %v3944_v46, %v3946_v57  ;;  %5676 = vmatmul.mubr.msk.f32.gmra.mrb[32].mxu0 %vm627_vm2, %v3933_v53  ;;  %5807 = vmatprep.subr.mxu0 %v6701_v58  ;;  %v6710_v16 = vsel %vm1048_vm4, %v3946_v57, %v6701_v58 }
 0xb80   : > { %4039 = vmatprep.subr.mxu1 %v6710_v16  ;;  %5808 = vmatpush3.msra.mxu0 %v6701_v58 }
 0xb81   : > { %5809 = vmatprep.mubr.msk.f32.mxu0 %vm627_vm2, %v3931_v52  ;;  %4040 = vmatpush1.msra.mxu1 %v6704_v59 }
 0xb82   : > { %4195 = vmatprep.subr.mxu0 %v3921_v36  ;;  %5677 = vmatmul.mubr.msk.f32.vlgmr.msra.gmra.mrb[28].mxu1 %vm627_vm2, %v3931_v52 }
 0xb83   : > { %4272 = vmatprep.subr.mxu1 %v3923_v31  ;;  %5810 = vmatmul.mubr.msk.f32.vlgmr.msra.gmra.mrb[34].mxu0 %vm627_vm2, %v3933_v53 }
 0xb84   : > { %4196 = vmatpush1.msra.mxu0 %v3920_v27  ;;  %4273 = vmatpush1.msra.mxu1 %v3922_v37 }
 0xb85   : > { %5812 = vmatprep.subr.mxu0 %v3924_v10  ;;  %4109 = vmatprep.mubr.f32.mxu1 %v6172_v48 }
 0xb86   : > { %5678 = vmatmul.mubr.msk.f32.gmra.mrb[30].mxu1 %vm627_vm2, %v3933_v53  ;;  %4259 = vmatprep.mubr.f32.mxu0 %v6172_v48  ;;  %v5697_v53 = vld [vmem:[%s6836_s5 + $0x20] sm:$0xff] }
 0xb87   : > { %5681 = vmatmul.mubr.msk.f32.vlgmr.msra.gmra.mrb[30].mxu0 %vm627_vm2, %v5673_v21  ;;  %4336 = vmatprep.mubr.f32.mxu1 %v6172_v48 }
 0xb88   : > { %5813 = vmatpush3.msra.mxu0 %v3924_v10  ;;  %4265 = vmatprep.mubr.f32.mxu0 %v6172_v48 }
 0xb8a   : > { %5683 = vmatmul.mubr.msk.f32.vlgmr.msra.gmra.mrb[28].mxu1 %vm627_vm2, %v5673_v21 }
 0xb8b   : > { %5682 = vmatmul.mubr.msk.f32.gmra.mrb[32].mxu0 %vm627_vm2, %v5674_v40  ;;  %4342 = vmatprep.mubr.f32.mxu1 %v6172_v48 }
 0xb8c   : > { %5814 = vmatprep.mubr.msk.f32.mxu0 %vm627_vm2, %v5673_v21 }
 0xb8e   : > { %5684 = vmatmul.mubr.msk.f32.gmra.mrb[30].mxu1 %vm627_vm2, %v5674_v40 }
 0xb8f   : > { %5815 = vmatmul.mubr.msk.f32.vlgmr.msra.gmra.mrb[34].mxu0 %vm627_vm2, %v5674_v40  ;;  %4649 = vmatprep.mubr.f32.mxu1 %v6172_v48  ;;  %v4435_v62 = vpop.permute.xlu1 %4434  ;;  %v4430_v15 = vpop.permute.xlu0 %4429 }
 0xb90   : > { %4578 = vmatprep.mubr.f32.mxu0 %v6172_v48 }
 0xc5a   : > { %v4261_v60 = vpop.f32.mrb[30].mxu0 }
 0xc5b   : > { %v4263_v61 = vpop.f32.mrb[31].mxu0  ;;  %v4437_v18 = vadd.f32 %v4430_v15, %v4261_v60 }
 0xc5c   : > { %v4438_v19 = vadd.f32 %v4430_v15, %v4263_v61 }
 0xc5d   : > { %v4338_v63 = vpop.f32.mrb[28].mxu1 }
 0xc5e   : > { %v4267_v54 = vpop.f32.mrb[32].mxu0  ;;  %v4340_v0 = vpop.f32.mrb[29].mxu1  ;;  %v4439_v49 = vadd.f32 %v4430_v15, %v4338_v63 }
 0xc5f   : > { %v4442_v1 = vadd.f32 %v4435_v62, %v4267_v54  ;;  %v4269_v26 = vpop.f32.mrb[33].mxu0  ;;  %v4440_v56 = vadd.f32 %v4430_v15, %v4340_v0 }
 0xc60   : > { %v4443_v32 = vadd.f32 %v4435_v62, %v4269_v26 }
 0xc61   : > { %v5689_v2 = vmul.f32 -1.442695, %v4442_v1  ;;  %v4344_v33 = vpop.f32.mrb[30].mxu1  ;;  %v5696_v1 = vld [vmem:[%s6835_s4 + $0x20] sm:$0xff] }
 0xc62   : > { %v5690_v3 = vmul.f32 -1.442695, %v4443_v32  ;;  %v4444_v4 = vadd.f32 %v4435_v62, %v4344_v33  ;;  %v4346_v17 = vpop.f32.mrb[31].mxu1  ;;  %v5816_v24 = vpop.f32.mrb[34].mxu0 }
 0xc63   : > { %6075 = vpow2.f32 %v5689_v2  ;;  %v4445_v28 = vadd.f32 %v4435_v62, %v4346_v17  ;;  %v4446_v8 = vadd.f32 %v5816_v24, %v4435_v62  ;;  %v4415_v11 = vpop.f32.mrb[35].mxu0 }
 0xc64   : > { %6077 = vpow2.f32 %v5690_v3  ;;  %v5691_v13 = vmul.f32 -1.442695, %v4444_v4  ;;  %v4441_v25 = vadd.f32 %v4430_v15, %v4415_v11 }
 0xc65   : > { %v5692_v14 = vmul.f32 -1.442695, %v4445_v28  ;;  %v5693_v50 = vmul.f32 -1.442695, %v4446_v8 }
 0xc66   : > { %6079 = vpow2.f32 %v5691_v13 }
 0xc67   : > { %6081 = vpow2.f32 %v5692_v14 }
 0xc68   : > { %6083 = vpow2.f32 %v5693_v50 }
 0xc69   : > { %6085 = vtanh.f32 %v4437_v18 }
 0xc6a   : > { %6087 = vtanh.f32 %v4438_v19 }
 0xc6b   : > { %6089 = vtanh.f32 %v4439_v49 }
 0xc6c   : > { %6091 = vtanh.f32 %v4440_v56 }
 0xc6d   : > { %v6076_v20 = vpop.eup %6075 }
 0xc6e   : > { %v6078_v22 = vpop.eup %6077  ;;  %v4467_v23 = vadd.f32 1.0, %v6076_v20  ;;  %v5701_v20 = vld [vmem:[%s6833_s2 + $0x50] sm:$0xff] }
 0xc6f   : > { %v4468_v55 = vadd.f32 1.0, %v6078_v22 }
 0xc70   : > { %v6080_v27 = vpop.eup %6079  ;;  %6093 = vrcp.f32 %v4467_v23 }
 0xc71   : > { %v6082_v29 = vpop.eup %6081  ;;  %6095 = vrcp.f32 %v4468_v55  ;;  %v4469_v30 = vadd.f32 1.0, %v6080_v27 }
 0xc72   : > { %v6084_v34 = vpop.eup %6083  ;;  %v4470_v35 = vadd.f32 1.0, %v6082_v29  ;;  %6097 = vtanh.f32 %v4441_v25 }
 0xc73   : > { %6099 = vrcp.f32 %v4469_v30  ;;  %v4471_v36 = vadd.f32 1.0, %v6084_v34  ;;  %v6086_v37 = vpop.eup %6085 }
 0xc74   : > { %6101 = vrcp.f32 %v4470_v35  ;;  %v6088_v38 = vpop.eup %6087 }
 0xc75   : > { %6103 = vrcp.f32 %v4471_v36  ;;  %v6090_v39 = vpop.eup %6089 }
 0xc76   : > { %v6092_v21 = vpop.eup %6091 }
 0xc7a   : > { %v6094_v40 = vpop.eup %6093 }
 0xc7b   : > { %v6096_v41 = vpop.eup %6095  ;;  %v4482_v42 = vmul.f32 %v6094_v40, %v6086_v37 }
 0xc7c   : > { %v6098_v31 = vpop.eup %6097  ;;  %v4483_v10 = vmul.f32 %v6096_v41, %v6088_v38 }
 0xc7d   : > { %v6100_v43 = vpop.eup %6099 }
 0xc7e   : > { %v6102_v44 = vpop.eup %6101  ;;  %v4484_v45 = vmul.f32 %v6100_v43, %v6090_v39 }
 0xc7f   : > { %v6104_v46 = vpop.eup %6103  ;;  %v4485_v47 = vmul.f32 %v6102_v44, %v6092_v21 }
 0xc80   : > { %v4486_v52 = vmul.f32 %v6104_v46, %v6098_v31 }
 0xc81   : > { %4500 = vrot.lane.b32.xlu1 %v4485_v47, %s6178_s26 }
 0xc82   : > { %4502 = vrot.lane.b32.xlu0 %v4486_v52, %s6178_s26 }
 0xc85   : > { %4498 = vrot.lane.b32.xlu1 %v4484_v45, %s6178_s26 }
 0xc86   : > { %4487 = vrot.lane.b32.xlu0 %v6465_v51, %s6183_s25 }
 0xc89   : > { %4496 = vrot.lane.b32.xlu1 %v4483_v10, %s6178_s26 }
 0xc8a   : > { %4494 = vrot.lane.b32.xlu0 %v4482_v42, %s6178_s26 }
 0xc8d   : > { %4666 = vperm.xlu1 %5953, %v5697_v53  }
 0xcf3   : > { %v4501_v57 = vpop.permute.xlu1 %4500 }
 0xcf4   : > { %v4503_v60 = vpop.permute.xlu0 %4502 }
 0xcf5   : > { %v4507_v61 = vsel %vm2018_vm6, %v4501_v57, %v4503_v60 }
 0xcf6   : > { %4585 = vmatprep.subr.mxu1 %v4507_v61 }
 0xcf7   : > { %v4499_v62 = vpop.permute.xlu1 %4498 }
 0xcf8   : > { %v4488_v63 = vpop.permute.xlu0 %4487  ;;  %v4506_v54 = vsel %vm2018_vm6, %v4499_v62, %v4501_v57 }
 0xcf9   : > { %4586 = vmatpush1.msra.mxu1 %v4506_v54 }
 0xcfa   : > { %5695 = vmatmul.mubr.msk.f32.vlgmr.msra.gmra.mrb[0].mxu1 %vm627_vm2, %v4488_v63  ;;  %4672 = vmatprep.subr.mxu1 %v4483_v10 }
 0xcfb   : > { %v4497_v0 = vpop.permute.xlu1 %4496  ;;  %4673 = vmatpush1.msra.mxu1 %v4482_v42  ;;  %4736 = vmatprep.mubr.f32.mxu1 %v6172_v48 }
 0xcfc   : > { %v4495_v26 = vpop.permute.xlu0 %4494  ;;  %4743 = vmatprep.subr.mxu1 %v4485_v47  ;;  %v4505_v32 = vsel %vm2018_vm6, %v4497_v0, %v4499_v62 }
 0xcfd   : > { %v4504_v2 = vsel %vm2018_vm6, %v4495_v26, %v4497_v0  ;;  %4514 = vmatprep.subr.mxu0 %v4505_v32 }
 0xcfe   : > { %4515 = vmatpush1.msra.mxu0 %v4504_v2  ;;  %5698 = vmatmul.mubr.msk.f32.vlgmr.msra.gmra.mrb[32].mxu1 %vm627_vm2, %v5696_v1 }
 0xcff   : > { %4744 = vmatpush1.msra.mxu1 %v4484_v45  ;;  %5694 = vmatmul.mubr.msk.f32.vlgmr.msra.gmra.mrb[0].mxu0 %vm627_vm2, %v4488_v63 }
 0xd00   : > { %5817 = vmatprep.subr.mxu0 %v6172_v48  ;;  %4807 = vmatprep.mubr.f32.mxu1 %v6172_v48 }
 0xd01   : > { %5818 = vmatpush3.msra.mxu0 %v4486_v52  ;;  %5819 = vmatprep.mubr.msk.f32.mxu0 %vm6174_vm3, %v6172_v48 }
 0xd02   : > { %5699 = vmatmul.mubr.msk.f32.vlgmr.msra.gmra.mrb[34].mxu1 %vm627_vm2, %v5696_v1 }
 0xd03   : > { %5820 = vmatmul.mubr.msk.f32.vlgmr.msra.gmra.mrb[36].mxu0 %vm627_vm2, %v5696_v1  ;;  %4989 = vmatprep.mubr.f32.mxu1 %v6172_v48 }
 0xd04   : > { %5066 = vmatprep.mubr.f32.mxu0 %v6172_v48 }
 0xd0c   : > { %v4667_v3 = vpop.permute.xlu1 %4666 }
 0xdd1   : > { %v4738_v33 = vpop.f32.mrb[32].mxu1 }
 0xdd2   : > { %v4740_v4 = vpop.f32.mrb[33].mxu1  ;;  %v4739_v15 = vadd.f32 %v4738_v33, %v4667_v3 }
 0xdd3   : > { %v4741_v17 = vadd.f32 %v4740_v4, %v4667_v3 }
 0xdd5   : > { %v4885_v24 = vadd.f32 %v4741_v17, %v6695_v5  ;;  %v4809_v28 = vpop.f32.mrb[34].mxu1  ;;  %v4884_v5 = vadd.f32 %v4739_v15, %v6692_v9  ;;  %v5712_v9 = vld [vmem:[%s6834_s3 + $0x58] sm:$0xff] }
 0xdd6   : > { %v4811_v8 = vpop.f32.mrb[35].mxu1  ;;  %v4880_v11 = vpop.f32.mrb[36].mxu0  ;;  %v4810_v18 = vadd.f32 %v4809_v28, %v4667_v3 }
 0xdd7   : > { %v4812_v13 = vadd.f32 %v4811_v8, %v4667_v3  ;;  %v4881_v14 = vadd.f32 %v4880_v11, %v4667_v3  ;;  %v5821_v50 = vpop.f32.mrb[37].mxu0  ;;  %4905 = vrot.lane.b32.xlu0 %v4885_v24, %s6178_s26 }
 0xdd8   : > { %v4886_v56 = vadd.f32 %v4810_v18, %v6704_v59  ;;  %v5711_v59 = vld [vmem:[%s6834_s3 + $0x50] sm:$0xff] }
 0xdd9   : > { %v4887_v19 = vadd.f32 %v4812_v13, %v6710_v16  ;;  %v4888_v49 = vadd.f32 %v4881_v14, %v6701_v58  ;;  %v5702_v58 = vld [vmem:[%s6833_s2 + $0x58] sm:$0xff]  ;;  %v593_v16 = vld [vmem:[#allocation2] sm:$0x1] }
 0xddb   : > { %4911 = vrot.lane.b32.xlu1 %v4888_v49, %s6178_s26  ;;  %4909 = vrot.lane.b32.xlu0 %v4887_v19, %s6178_s26 }
 0xddf   : > { %4907 = vrot.lane.b32.xlu1 %v4886_v56, %s6178_s26  ;;  %4903 = vrot.lane.b32.xlu0 %v4884_v5, %s6178_s26  ;;  %s6184_s26 = smov 88  }
 0xde3   : > { %4894 = vrot.lane.b32.xlu1 %v5701_v20, %s6176_s28  ;;  %4896 = vrot.lane.b32.xlu0 %v5702_v58, %s6176_s28  ;;  %s5578_s28 = sshll.u32 %s6851_s30, 3 }
 0xde4   : > { %s379_s14 = sadd.s32 %s5578_s28, %s6855_s19 }
 0xde5   : > { %s380_s24 = scalar_lea.vmem %s6839_s8, %s379_s14 }
 0xde7   : > { %5247 = vperm.xlu1 %5953, %v5712_v9   ;;  %5242 = vperm.xlu0 %5954, %v5711_v59  }
 0xdeb   : > { %596 = vperm.xlu0 %5954, %v593_v16   ;;  %5290 = vrot.lane.b32.xlu1 %v6465_v51, %s6184_s26 }
 0xe49   : > { %v4906_v22 = vpop.permute.xlu0 %4905 }
 0xe4d   : > { %v4912_v23 = vpop.permute.xlu1 %4911  ;;  %v4910_v25 = vpop.permute.xlu0 %4909 }
 0xe4e   : > { %v4916_v55 = vsel %vm2018_vm6, %v4910_v25, %v4912_v23 }
 0xe4f   : > { %5002 = vmatprep.subr.mxu0 %v4916_v55 }
 0xe51   : > { %v4908_v27 = vpop.permute.xlu1 %4907  ;;  %v4904_v29 = vpop.permute.xlu0 %4903 }
 0xe52   : > { %v4915_v30 = vsel %vm2018_vm6, %v4908_v27, %v4910_v25  ;;  %v4913_v34 = vsel %vm2018_vm6, %v4904_v29, %v4906_v22  ;;  %v4914_v35 = vsel %vm2018_vm6, %v4906_v22, %v4908_v27 }
 0xe53   : > { %4925 = vmatprep.subr.mxu1 %v4914_v35  ;;  %5003 = vmatpush1.msra.mxu0 %v4915_v30 }
 0xe54   : > { %4926 = vmatpush1.msra.mxu1 %v4913_v34  ;;  %5160 = vmatprep.subr.mxu0 %v4887_v19 }
 0xe55   : > { %v4895_v36 = vpop.permute.xlu1 %4894  ;;  %5083 = vmatprep.subr.mxu1 %v4885_v24  ;;  %v4897_v51 = vpop.permute.xlu0 %4896 }
 0xe56   : > { %5703 = vmatmul.mubr.msk.f32.vlgmr.msra.gmra.mrb[36].mxu1 %vm627_vm2, %v4895_v36  ;;  %5705 = vmatmul.mubr.msk.f32.vlgmr.msra.gmra.mrb[38].mxu0 %vm627_vm2, %v4895_v36 }
 0xe57   : > { %5084 = vmatpush1.msra.mxu1 %v4884_v5  ;;  %5161 = vmatpush1.msra.mxu0 %v4886_v56  ;;  %v6185_v5 = vmov 1966171168  }
 0xe58   : > { %4995 = vmatprep.mubr.f32.mxu1 %v6172_v48  ;;  %5072 = vmatprep.mubr.f32.mxu0 %v6172_v48  ;;  %v5447_v56 = vunpack.c.l.s4 %v6185_v5 }
 0xe5a   : > { %5704 = vmatmul.mubr.msk.f32.gmra.mrb[38].mxu1 %vm627_vm2, %v4897_v51  ;;  %5706 = vmatmul.mubr.msk.f32.gmra.mrb[40].mxu0 %vm627_vm2, %v4897_v51 }
 0xe5b   : > { %5147 = vmatprep.mubr.f32.mxu1 %v6172_v48  ;;  %5224 = vmatprep.mubr.f32.mxu0 %v6172_v48 }
 0xe5e   : > { %5707 = vmatmul.mubr.msk.f32.vlgmr.msra.gmra.mrb[36].mxu1 %vm627_vm2, %v5701_v20  ;;  %5709 = vmatmul.mubr.msk.f32.vlgmr.msra.gmra.mrb[38].mxu0 %vm627_vm2, %v5701_v20 }
 0xe5f   : > { %5153 = vmatprep.mubr.f32.mxu1 %v6172_v48  ;;  %5230 = vmatprep.mubr.f32.mxu0 %v6172_v48 }
 0xe62   : > { %5708 = vmatmul.mubr.msk.f32.gmra.mrb[38].mxu1 %vm627_vm2, %v5702_v58  ;;  %5710 = vmatmul.mubr.msk.f32.gmra.mrb[40].mxu0 %vm627_vm2, %v5702_v58  ;;  %v5448_v58 = vunpack.c.0.s8 %v5447_v56 }
 0xe63   : > { %5358 = vmatprep.mubr.f32.mxu0 %v6172_v48  ;;  %5429 = vmatprep.mubr.f32.mxu1 %v6172_v48 }
 0xe64   : > { %v5451_v27 = vsub.s32 %v5448_v58, %v6286_v7 }
 0xe66   : > { %v5248_v40 = vpop.permute.xlu1 %5247  ;;  %v5243_v48 = vpop.permute.xlu0 %5242 }
 0xe6a   : > { %v5291_v49 = vpop.permute.xlu1 %5290  ;;  %v597_v20 = vpop.permute.xlu0 %596 }
 0xe6b   : > { %v602_v9 = vrot.slane %v597_v20, %v6295_v12 }
 0xf31   : > { %v5149_v37 = vpop.f32.mrb[36].mxu1  ;;  %v5226_v38 = vpop.f32.mrb[38].mxu0 }
 0xf32   : > { %v5151_v39 = vpop.f32.mrb[37].mxu1  ;;  %v5228_v21 = vpop.f32.mrb[39].mxu0  ;;  %v5250_v60 = vadd.f32 %v5243_v48, %v5149_v37  ;;  %v5252_v61 = vadd.f32 %v5243_v48, %v5226_v38 }
 0xf33   : > { %v5251_v62 = vadd.f32 %v5243_v48, %v5151_v39  ;;  %v5253_v63 = vadd.f32 %v5243_v48, %v5228_v21 }
 0xf35   : > { %v5155_v41 = vpop.f32.mrb[38].mxu1  ;;  %v5232_v42 = vpop.f32.mrb[40].mxu0 }
 0xf36   : > { %v5254_v31 = vadd.f32 %v5248_v40, %v5155_v41  ;;  %v5256_v10 = vadd.f32 %v5248_v40, %v5232_v42  ;;  %v5157_v43 = vpop.f32.mrb[39].mxu1  ;;  %v5234_v44 = vpop.f32.mrb[41].mxu0 }
 0xf37   : > { %v5255_v45 = vadd.f32 %v5248_v40, %v5157_v43  ;;  %v5257_v46 = vadd.f32 %v5248_v40, %v5234_v44 }
 0xf38   : > { %v5713_v47 = vmul.f32 -1.442695, %v5254_v31  ;;  %v5715_v52 = vmul.f32 -1.442695, %v5256_v10 }
 0xf39   : > { %v5714_v53 = vmul.f32 -1.442695, %v5255_v45  ;;  %v5716_v57 = vmul.f32 -1.442695, %v5257_v46 }
 0xf3a   : > { %6105 = vpow2.f32 %v5713_v47 }
 0xf3b   : > { %6107 = vpow2.f32 %v5715_v52 }
 0xf3c   : > { %6109 = vpow2.f32 %v5714_v53 }
 0xf3d   : > { %6111 = vpow2.f32 %v5716_v57 }
 0xf3e   : > { %6113 = vtanh.f32 %v5250_v60 }
 0xf3f   : > { %6115 = vtanh.f32 %v5252_v61 }
 0xf40   : > { %6117 = vtanh.f32 %v5251_v62 }
 0xf41   : > { %6119 = vtanh.f32 %v5253_v63 }
 0xf44   : > { %v6106_v54 = vpop.eup %6105 }
 0xf45   : > { %v6108_v0 = vpop.eup %6107  ;;  %v5274_v1 = vadd.f32 1.0, %v6106_v54 }
 0xf46   : > { %v6110_v26 = vpop.eup %6109  ;;  %v5276_v32 = vadd.f32 1.0, %v6108_v0 }
 0xf47   : > { %v6112_v2 = vpop.eup %6111  ;;  %6121 = vrcp.f32 %v5274_v1  ;;  %v5275_v33 = vadd.f32 1.0, %v6110_v26 }
 0xf48   : > { %6123 = vrcp.f32 %v5276_v32  ;;  %v5277_v3 = vadd.f32 1.0, %v6112_v2  ;;  %v6114_v4 = vpop.eup %6113 }
 0xf49   : > { %6125 = vrcp.f32 %v5275_v33  ;;  %v6116_v17 = vpop.eup %6115 }
 0xf4a   : > { %6127 = vrcp.f32 %v5277_v3  ;;  %v6118_v24 = vpop.eup %6117 }
 0xf4b   : > { %v6120_v28 = vpop.eup %6119 }
 0xf51   : > { %v6122_v8 = vpop.eup %6121 }
 0xf52   : > { %v6124_v11 = vpop.eup %6123  ;;  %v5286_v13 = vmul.f32 %v6122_v8, %v6114_v4 }
 0xf53   : > { %v6126_v14 = vpop.eup %6125  ;;  %v5288_v50 = vmul.f32 %v6124_v11, %v6116_v17 }
 0xf54   : > { %v6128_v15 = vpop.eup %6127  ;;  %v5287_v18 = vmul.f32 %v6126_v14, %v6118_v24 }
 0xf55   : > { %v5289_v19 = vmul.f32 %v6128_v15, %v6120_v28 }
 0xf56   : > { %5294 = vmatprep.subr.mxu0 %v5287_v18 }
 0xf57   : > { %5365 = vmatprep.subr.mxu1 %v5289_v19  ;;  %5295 = vmatpush1.msra.mxu0 %v5286_v13 }
 0xf58   : > { %5366 = vmatpush1.msra.mxu1 %v5288_v50  ;;  %5717 = vmatmul.mubr.msk.f32.vlgmr.msra.gmra.mrb[0].mxu0 %vm627_vm2, %v5291_v49 }
 0xf59   : > { %5718 = vmatmul.mubr.msk.f32.vlgmr.msra.gmra.mrb[0].mxu1 %vm627_vm2, %v5291_v49 }
0x102b   : > { %v5360_v59 = vpop.f32.mrb[0].mxu0 }
0x102c   : > { %v5822_v16 = vadd.f32 %v5360_v59, %v602_v9  ;;  %v5431_v22 = vpop.f32.mrb[0].mxu1  ;;  %v5362_v23 = vpop.f32.mrb[1].mxu0 }
0x102d   : > { %v5824_v25 = vadd.f32 %v5431_v22, %v602_v9  ;;  %v5823_v55 = vadd.f32 %v5362_v23, %v602_v9  ;;  %v5433_v29 = vpop.f32.mrb[1].mxu1 }
0x102e   : > { %v5825_v30 = vadd.f32 %v5433_v29, %v602_v9 }
0x102f   : > { %v5444_v34 = vcombine.low %v5822_v16, %v5823_v55 }
0x1030   : > { %v5445_v35 = vcombine.low %v5824_v25, %v5825_v30 }
0x1031   : > { %v5452_v36 = vrot.slane %v5444_v34, %v5451_v27 }
0x1032   : > { %v5459_v51 = vrot.slane %v5445_v35, %v5451_v27 }
0x1034   : > { %v5460_v37 = vcombine.low %v5452_v36, %v5459_v51 }
0x1036   : > { %v5467_v12 = vrot.slane %v5460_v37, %v5451_v27 }
0x1038   : > { %5473 = vst.msk [vmem:[%s380_s24] sm:$0xf] %vm5471_vm9, %v5467_v12 }
0x1039 PF: > { %s20_s11 = sadd.s32 1, %s6167_s11   ;;  %s6840_s29 = smov %s6159_s9 }
0x103a   : > { %p17_p9 = scmp.ge.s32.totalorder %s20_s11, 6   ;;  %s6841_s30 = smov %s6163_s10 }
0x103b   : > { %s6842_s9 = smov %s6845_s7  ;;  %s6843_s10 = smov %s6849_s12 }
0x103c   :  { %19 = sbr.rel (!%p17_p9) target bundleno = 3 (0x3), region = 103 }

</bundles_post_ra>
